<compile_context>
chip_gen: v6e
topology: v6e:2x2x1
jax: 0.10.0
libtpu: 0.0.40
codegen_flags: <defaults>
</compile_context>

<pallas_src>
import functools

import jax
import jax.numpy as jnp
from jax.experimental import pallas as pl
from jax.experimental.pallas import tpu as pltpu

HIDDEN = 256   # fixed by the module definition
_LANE = 128


def _round_up(x, m):
    return ((x + m - 1) // m) * m


def _make_kernel(write_hidden):
    def kernel(x_ref, w1_ref, b12_ref, w2_ref, wh_ref, bh_ref, *out_refs):
        if write_hidden:
            h_ref, head_ref = out_refs
        else:
            (head_ref,) = out_refs
        # fc1 + ReLU  (bf16 MXU inputs, f32 accumulate + f32 elementwise)
        h1 = jnp.dot(x_ref[...], w1_ref[...], preferred_element_type=jnp.float32)
        h1 = jnp.maximum(h1 + b12_ref[:, :HIDDEN], 0.0)
        # fc2 + ReLU
        h2 = jnp.dot(h1.astype(jnp.bfloat16), w2_ref[...],
                     preferred_element_type=jnp.float32)
        h2 = jnp.maximum(h2 + b12_ref[:, HIDDEN:], 0.0)
        if write_hidden:
            h_ref[...] = h2.astype(h_ref.dtype)
        # Merged actor+critic head: one lane-dense 128-wide matmul, f32 weights
        # (keeps the critic scalar in f32), unmasked full-lane store.
        head = jnp.dot(h2, wh_ref[...], preferred_element_type=jnp.float32)
        head_ref[...] = head + bh_ref[...]
    return kernel


@functools.partial(jax.jit,
                   static_argnames=("tm", "hidden_dtype", "return_hidden"))
def actor_critic_forward(x, w1, b1, w2, b2, wa, ba, wc, bc, *,
                         tm=1024, hidden_dtype=jnp.bfloat16,
                         return_hidden=True):
    """Fused ActorCritic forward.

    x:  (B, input_dim)
    w1: (input_dim, 256), b1: (1, 256)
    w2: (256, 256),       b2: (1, 256)
    wa: (256, A),         ba: (1, A)      (actor head)
    wc: (256, 1),         bc: (1, 1)      (critic head)
    returns: (hidden (B,256) [if return_hidden], logits (B,A) f32, value (B,1) f32)
    """
    B, K = x.shape
    A = wa.shape[1]
    HEAD_N = _round_up(A + 1, _LANE)          # actor cols [0,A), critic col A

    # Batch tile: multiple of 8, no larger than the padded batch (so a small
    # rollout batch is a single grid step). On v7x keep >=2 tiles if you want
    # both TensorCores busy for very large batches.
    tm = _round_up(max(8, min(int(tm), _round_up(B, 8))), 8)
    n_tiles = pl.cdiv(B, tm)
    Bp = n_tiles * tm

    # Stream x as bf16 (half the input DMA); pad batch to the tile grid.
    xb = x.astype(jnp.bfloat16)
    if Bp != B:
        xb = jnp.pad(xb, ((0, Bp - B), (0, 0)))
    # NOTE: zero-padded rows still yield nonzero ReLU(bias) activations; they
    # are sliced off below and must not be consumed un-sliced.

    # Pack parameters: bf16 hidden weights, one f32 bias slab, one f32 merged
    # (actor|critic) head padded to 128 lanes.
    w1b = w1.astype(jnp.bfloat16)
    w2b = w2.astype(jnp.bfloat16)
    b12 = jnp.concatenate(
        [b1.reshape(1, HIDDEN), b2.reshape(1, HIDDEN)], axis=1).astype(jnp.float32)
    w_head = jnp.zeros((HIDDEN, HEAD_N), jnp.float32)
    w_head = w_head.at[:, :A].set(wa.astype(jnp.float32))
    w_head = w_head.at[:, A:A + 1].set(wc.astype(jnp.float32))
    b_head = jnp.zeros((1, HEAD_N), jnp.float32)
    b_head = b_head.at[:, :A].set(ba.reshape(1, A).astype(jnp.float32))
    b_head = b_head.at[:, A:A + 1].set(bc.reshape(1, 1).astype(jnp.float32))

    # Weights / biases stay VMEM-resident across grid steps; x & outputs stream.
    resident = lambda shape: pl.BlockSpec(shape, lambda i: (0, 0))
    hid_bytes = jnp.dtype(hidden_dtype).itemsize

    out_specs = []
    out_shape = []
    if return_hidden:
        out_specs.append(pl.BlockSpec((tm, HIDDEN), lambda i: (i, 0)))
        out_shape.append(jax.ShapeDtypeStruct((Bp, HIDDEN), hidden_dtype))
    out_specs.append(pl.BlockSpec((tm, HEAD_N), lambda i: (i, 0)))
    out_shape.append(jax.ShapeDtypeStruct((Bp, HEAD_N), jnp.float32))

    # Rough per-call cost + VMEM footprint (double-buffered streams + resident
    # weights + f32 intermediates); raise the scoped-VMEM limit only if the
    # tile is big enough to exceed v5e's 16 MiB default, capped at 64 MiB (v7x).
    flops = 2 * Bp * (K * HIDDEN + HIDDEN * HIDDEN + HIDDEN * HEAD_N)
    resident_bytes = (K * HIDDEN * 2 + HIDDEN * HIDDEN * 2 + 2 * HIDDEN * 4
                      + HIDDEN * HEAD_N * 4 + HEAD_N * 4)
    out_stream = tm * HEAD_N * 4 + (tm * HIDDEN * hid_bytes if return_hidden else 0)
    vmem_est = (2 * resident_bytes
                + 2 * (tm * K * 2 + out_stream)      # double-buffered streams
                + 3 * tm * HIDDEN * 4)               # f32 intermediates
    bytes_accessed = (Bp * K * 2 + resident_bytes
                      + Bp * HEAD_N * 4
                      + (Bp * HIDDEN * hid_bytes if return_hidden else 0))
    cp_kwargs = dict(dimension_semantics=("parallel",))
    if 2 * vmem_est > (16 << 20):
        cp_kwargs["vmem_limit_bytes"] = int(min(2 * vmem_est, 64 << 20))

    outs = pl.pallas_call(
        _make_kernel(return_hidden),
        grid=(n_tiles,),
        in_specs=[
            pl.BlockSpec((tm, K), lambda i: (i, 0)),        # x tile streams
            resident((K, HIDDEN)),                           # w1 (bf16)
            resident((1, 2 * HIDDEN)),                       # [b1 | b2] (f32)
            resident((HIDDEN, HIDDEN)),                      # w2 (bf16)
            resident((HIDDEN, HEAD_N)),                      # [wa | wc | 0] (f32)
            resident((1, HEAD_N)),                           # [ba | bc | 0] (f32)
        ],
        out_specs=out_specs,
        out_shape=out_shape,
        compiler_params=pltpu.CompilerParams(**cp_kwargs),
        cost_estimate=pl.CostEstimate(
            flops=flops, transcendentals=0, bytes_accessed=bytes_accessed),
    )(xb, w1b, b12, w2b, w_head, b_head)

    if return_hidden:
        h, head = outs
    else:
        (head,) = outs
    logits = head[:B, :A]
    value = head[:B, A:A + 1]
    if return_hidden:
        return h[:B], logits, value
    return logits, value


def init_params(key, input_dim, output_dim, hidden=HIDDEN):
    """PyTorch-style uniform(-1/sqrt(fan_in), 1/sqrt(fan_in)) init (f32 masters)."""
    ks = jax.random.split(key, 8)
    b_in = 1.0 / jnp.sqrt(jnp.float32(input_dim))
    b_h = 1.0 / jnp.sqrt(jnp.float32(hidden))
    w1 = jax.random.uniform(ks[0], (input_dim, hidden), jnp.float32, -b_in, b_in)
    b1 = jax.random.uniform(ks[1], (1, hidden), jnp.float32, -b_in, b_in)
    w2 = jax.random.uniform(ks[2], (hidden, hidden), jnp.float32, -b_h, b_h)
    b2 = jax.random.uniform(ks[3], (1, hidden), jnp.float32, -b_h, b_h)
    wa = jax.random.uniform(ks[4], (hidden, output_dim), jnp.float32, -b_h, b_h)
    ba = jax.random.uniform(ks[5], (1, output_dim), jnp.float32, -b_h, b_h)
    wc = jax.random.uniform(ks[6], (hidden, 1), jnp.float32, -b_h, b_h)
    bc = jax.random.uniform(ks[7], (1, 1), jnp.float32, -b_h, b_h)
    return w1, b1, w2, b2, wa, ba, wc, bc


if __name__ == "__main__":
    key = jax.random.PRNGKey(0)
    kx, kp = jax.random.split(key)

    B, INPUT_DIM, OUTPUT_DIM = 256, 32, 4   # small PPO rollout batch
    x = jax.random.normal(kx, (B, INPUT_DIM), jnp.float32)
    w1, b1, w2, b2, wa, ba, wc, bc = init_params(kp, INPUT_DIM, OUTPUT_DIM)

    h, logits, value = actor_critic_forward(x, w1, b1, w2, b2, wa, ba, wc, bc)
    jax.block_until_ready((h, logits, value))

    assert h.shape == (B, HIDDEN)
    assert logits.shape == (B, OUTPUT_DIM)
    assert value.shape == (B, 1)

    # Reference mirroring the kernel arithmetic (bf16 fc1/fc2, f32 heads).
    xb = x.astype(jnp.bfloat16)
    w1b, w2b = w1.astype(jnp.bfloat16), w2.astype(jnp.bfloat16)
    r1 = jnp.maximum(jnp.dot(xb, w1b, preferred_element_type=jnp.float32) + b1, 0.0)
    r2 = jnp.maximum(jnp.dot(r1.astype(jnp.bfloat16), w2b,
                             preferred_element_type=jnp.float32) + b2, 0.0)
    rl = r2 @ wa + ba
    rv = r2 @ wc + bc
    assert jnp.allclose(h.astype(jnp.float32), r2, atol=2e-2, rtol=2e-2)
    assert jnp.allclose(logits, rl, atol=2e-2, rtol=2e-2)
    assert jnp.allclose(value, rv, atol=2e-2, rtol=2e-2)

    # Sanity check against pure-f32 PyTorch semantics (looser: bf16 fc weights).
    f1 = jnp.maximum(x @ w1 + b1, 0.0)
    f2 = jnp.maximum(f1 @ w2 + b2, 0.0)
    assert jnp.allclose(h.astype(jnp.float32), f2, atol=5e-2, rtol=5e-2)
    assert jnp.allclose(logits, f2 @ wa + ba, atol=5e-2, rtol=5e-2)
    assert jnp.allclose(value, f2 @ wc + bc, atol=5e-2, rtol=5e-2)

    # Heads-only path (what get_action / evaluate need) also works.
    lo2, va2 = actor_critic_forward(x, w1, b1, w2, b2, wa, ba, wc, bc,
                                    return_hidden=False)
    jax.block_until_ready((lo2, va2))
    assert jnp.allclose(lo2, logits) and jnp.allclose(va2, value)

    # TODO(synk): Categorical sampling / log_prob / entropy from get_action &
    # evaluate are plain JAX on the fused logits/value outputs (softmax etc.).
    print("KERNEL_OK")
</pallas_src>

<mosaic_0001>
module attributes {stable_mosaic.version = 11 : i64} {
  func.func @kernel(%arg0: i32, %arg1: memref<256x32xbf16, #tpu.memory_space<vmem>>, %arg2: memref<32x256xbf16, #tpu.memory_space<vmem>>, %arg3: memref<1x512xf32, #tpu.memory_space<vmem>>, %arg4: memref<256x256xbf16, #tpu.memory_space<vmem>>, %arg5: memref<256x128xf32, #tpu.memory_space<vmem>>, %arg6: memref<1x128xf32, #tpu.memory_space<vmem>>, %arg7: memref<256x256xbf16, #tpu.memory_space<vmem>>, %arg8: memref<256x128xf32, #tpu.memory_space<vmem>>) attributes {dimension_semantics = [#tpu.dimension_semantics<parallel>], iteration_bounds = array<i64: 1>, scalar_prefetch = 0 : i64, scratch_operands = 0 : i64, tpu.core_type = #tpu.core_type<tc>, window_params = [{transform_indices = @transform_0, window_bounds = array<i64: 256, 32>}, {pipeline_mode = #tpu.pipeline_mode<synchronous>, transform_indices = @transform_1, window_bounds = array<i64: 32, 256>}, {pipeline_mode = #tpu.pipeline_mode<synchronous>, transform_indices = @transform_2, window_bounds = array<i64: 1, 512>}, {pipeline_mode = #tpu.pipeline_mode<synchronous>, transform_indices = @transform_3, window_bounds = array<i64: 256, 256>}, {pipeline_mode = #tpu.pipeline_mode<synchronous>, transform_indices = @transform_4, window_bounds = array<i64: 256, 128>}, {pipeline_mode = #tpu.pipeline_mode<synchronous>, transform_indices = @transform_5, window_bounds = array<i64: 1, 128>}, {transform_indices = @transform_6, window_bounds = array<i64: 256, 256>}, {transform_indices = @transform_7, window_bounds = array<i64: 256, 128>}]} {
    %c0 = arith.constant 0 : index
    %c0_0 = arith.constant 0 : index
    %0 = vector.load %arg1[%c0, %c0_0] : memref<256x32xbf16, #tpu.memory_space<vmem>>, vector<256x32xbf16>
    %c0_1 = arith.constant 0 : index
    %c0_2 = arith.constant 0 : index
    %1 = vector.load %arg2[%c0_1, %c0_2] : memref<32x256xbf16, #tpu.memory_space<vmem>>, vector<32x256xbf16>
    %cst = arith.constant dense<0.000000e+00> : vector<256x256xf32>
    %2 = tpu.matmul %0, %1, %cst {dimension_numbers = #tpu.dot_dimension_numbers<[1], [0], [0], [1], [0, 0, 1, 1], [], []>} : vector<256x32xbf16>, vector<32x256xbf16>, vector<256x256xf32> -> vector<256x256xf32>
    %c0_3 = arith.constant 0 : index
    %c0_4 = arith.constant 0 : index
    %3 = vector.load %arg3[%c0_3, %c0_4] : memref<1x512xf32, #tpu.memory_space<vmem>>, vector<1x256xf32>
    %4 = vector.broadcast %3 : vector<1x256xf32> to vector<256x256xf32>
    %5 = arith.addf %2, %4 : vector<256x256xf32>
    %cst_5 = arith.constant 0.000000e+00 : f32
    %6 = vector.broadcast %cst_5 : f32 to vector<256x256xf32>
    %7 = arith.maximumf %5, %6 : vector<256x256xf32>
    %8 = arith.truncf %7 : vector<256x256xf32> to vector<256x256xbf16>
    %c0_6 = arith.constant 0 : index
    %c0_7 = arith.constant 0 : index
    %9 = vector.load %arg4[%c0_6, %c0_7] : memref<256x256xbf16, #tpu.memory_space<vmem>>, vector<256x256xbf16>
    %cst_8 = arith.constant dense<0.000000e+00> : vector<256x256xf32>
    %10 = tpu.matmul %8, %9, %cst_8 {dimension_numbers = #tpu.dot_dimension_numbers<[1], [0], [0], [1], [0, 0, 1, 1], [], []>} : vector<256x256xbf16>, vector<256x256xbf16>, vector<256x256xf32> -> vector<256x256xf32>
    %c0_9 = arith.constant 0 : index
    %c256 = arith.constant 256 : index
    %11 = vector.load %arg3[%c0_9, %c256] : memref<1x512xf32, #tpu.memory_space<vmem>>, vector<1x256xf32>
    %12 = vector.broadcast %11 : vector<1x256xf32> to vector<256x256xf32>
    %13 = arith.addf %10, %12 : vector<256x256xf32>
    %cst_10 = arith.constant 0.000000e+00 : f32
    %14 = vector.broadcast %cst_10 : f32 to vector<256x256xf32>
    %15 = arith.maximumf %13, %14 : vector<256x256xf32>
    %16 = arith.truncf %15 : vector<256x256xf32> to vector<256x256xbf16>
    %c0_11 = arith.constant 0 : index
    %c0_12 = arith.constant 0 : index
    %17 = vector.load %arg7[%c0_11, %c0_12] : memref<256x256xbf16, #tpu.memory_space<vmem>>, vector<256x256xbf16>
    tpu.vector_store %arg7[%c0_11, %c0_12], %16 {strides = array<i32>} : memref<256x256xbf16, #tpu.memory_space<vmem>>, vector<256x256xbf16>,
    %c0_13 = arith.constant 0 : index
    %c0_14 = arith.constant 0 : index
    %18 = vector.load %arg5[%c0_13, %c0_14] : memref<256x128xf32, #tpu.memory_space<vmem>>, vector<256x128xf32>
    %cst_15 = arith.constant dense<0.000000e+00> : vector<256x128xf32>
    %19 = tpu.matmul %15, %18, %cst_15 {dimension_numbers = #tpu.dot_dimension_numbers<[1], [0], [0], [1], [0, 0, 1, 1], [], []>} : vector<256x256xf32>, vector<256x128xf32>, vector<256x128xf32> -> vector<256x128xf32>
    %c0_16 = arith.constant 0 : index
    %c0_17 = arith.constant 0 : index
    %20 = vector.load %arg6[%c0_16, %c0_17] : memref<1x128xf32, #tpu.memory_space<vmem>>, vector<1x128xf32>
    %21 = vector.broadcast %20 : vector<1x128xf32> to vector<256x128xf32>
    %22 = arith.addf %19, %21 : vector<256x128xf32>
    %c0_18 = arith.constant 0 : index
    %c0_19 = arith.constant 0 : index
    %23 = vector.load %arg8[%c0_18, %c0_19] : memref<256x128xf32, #tpu.memory_space<vmem>>, vector<256x128xf32>
    tpu.vector_store %arg8[%c0_18, %c0_19], %22 {strides = array<i32>} : memref<256x128xf32, #tpu.memory_space<vmem>>, vector<256x128xf32>,
    return
  }
  func.func @transform_0(%arg0: i32) -> (i32, i32) {
    %c0_i32 = arith.constant 0 : i32
    %c0_i32_0 = arith.constant 0 : i32
    return %arg0, %c0_i32 : i32, i32
  }
  func.func @transform_1(%arg0: i32) -> (i32, i32) {
    %c0_i32 = arith.constant 0 : i32
    %c0_i32_0 = arith.constant 0 : i32
    %c0_i32_1 = arith.constant 0 : i32
    return %c0_i32, %c0_i32_0 : i32, i32
  }
  func.func @transform_2(%arg0: i32) -> (i32, i32) {
    %c0_i32 = arith.constant 0 : i32
    %c0_i32_0 = arith.constant 0 : i32
    %c0_i32_1 = arith.constant 0 : i32
    return %c0_i32, %c0_i32_0 : i32, i32
  }
  func.func @transform_3(%arg0: i32) -> (i32, i32) {
    %c0_i32 = arith.constant 0 : i32
    %c0_i32_0 = arith.constant 0 : i32
    %c0_i32_1 = arith.constant 0 : i32
    return %c0_i32, %c0_i32_0 : i32, i32
  }
  func.func @transform_4(%arg0: i32) -> (i32, i32) {
    %c0_i32 = arith.constant 0 : i32
    %c0_i32_0 = arith.constant 0 : i32
    %c0_i32_1 = arith.constant 0 : i32
    return %c0_i32, %c0_i32_0 : i32, i32
  }
  func.func @transform_5(%arg0: i32) -> (i32, i32) {
    %c0_i32 = arith.constant 0 : i32
    %c0_i32_0 = arith.constant 0 : i32
    %c0_i32_1 = arith.constant 0 : i32
    return %c0_i32, %c0_i32_0 : i32, i32
  }
  func.func @transform_6(%arg0: i32) -> (i32, i32) {
    %c0_i32 = arith.constant 0 : i32
    %c0_i32_0 = arith.constant 0 : i32
    return %arg0, %c0_i32 : i32, i32
  }
  func.func @transform_7(%arg0: i32) -> (i32, i32) {
    %c0_i32 = arith.constant 0 : i32
    %c0_i32_0 = arith.constant 0 : i32
    return %arg0, %c0_i32 : i32, i32
  }
}

</mosaic_0001>

<bundles_post_ra>
// kernel: actor_critic_forward.1
= control target key start
LH: loop header
LB: loop body
LE: loop exit
PB: predicated region body
PF: predicated region fallthrough
CT: control target
= control target key end

     0   :  { %v1748_v2 = vmov 0   ;;  %vm175_vm0 = vcmask 261120   ;;  %s2462_s0 = inlined_call_operand.vmem [shape: bf16[256,32], index: 0, kind: input, shape index: {}]   ;;  %s2463_s1 = inlined_call_operand.vmem [shape: bf16[32,256], index: 1, kind: input, shape index: {}]   ;;  %s2464_s2 = inlined_call_operand.vmem [shape: f32[1,512], index: 2, kind: input, shape index: {}]   ;;  %s2465_s3 = inlined_call_operand.vmem [shape: bf16[256,256], index: 3, kind: input, shape index: {}]   ;;  %s2466_s4 = inlined_call_operand.vmem [shape: f32[256,128], index: 4, kind: input, shape index: {}]   ;;  %s2467_s5 = inlined_call_operand.vmem [shape: f32[1,128], index: 5, kind: input, shape index: {}]   ;;  %s2468_s6 = inlined_call_operand.hbm [shape: bf16[256,256], index: 6, kind: output, shape index: {0}]   ;;  %s2469_s7 = inlined_call_operand.vmem [shape: f32[256,128], index: 7, kind: output, shape index: {1}]  }
   0x1   :  { %v1656_v0 = vld [vmem:[%s2463_s1 + $0x14] ss:$8 sps:$4 sm:$0xff]   ;;  %v1658_v1 = vld [vmem:[%s2463_s1 + $0x10] ss:$8 sps:$4 sm:$0xff]   ;;  %256 = vmatprep.mubr.bf16.mxu0 %v1748_v2  ;;  %336 = vmatprep.mubr.bf16.mxu1 %v1748_v2  ;;  %v1659_v3 = vld [vmem:[%s2463_s1 + $0x4] ss:$8 sps:$4 sm:$0xff]  }
   0x2   :  { %236 = vmatprep.subr.bf16.mxu0 %v1656_v0  ;;  %1647 = vmatprep.subr.bf16.mxu1 %v1656_v0  ;;  %v1661_v4 = vld [vmem:[%s2463_s1] ss:$8 sps:$4 sm:$0xff]   ;;  %v1678_v9 = vld [vmem:[%s2465_s3 + $0x70] ss:$8 sps:$4 sm:$0xff]   ;;  %v1680_v10 = vld [vmem:[%s2465_s3 + $0x74] ss:$8 sps:$4 sm:$0xff]  }
   0x3   :  { %237 = vmatpush1.bf16.msra.mxu0 %v1658_v1  ;;  %1649 = vmatpush1.bf16.msra.mxu1 %v1658_v1  ;;  %v1662_v5 = vld [vmem:[%s2462_s0] sm:$0xff]   ;;  %v1663_v7 = vld [vmem:[%s2462_s0 + $0x8] sm:$0xff]   ;;  %v1664_v12 = vld [vmem:[%s2462_s0 + $0x10] sm:$0xff]  }
   0x4   :  { %238 = vmatprep.subr.bf16.mxu0 %v1659_v3  ;;  %1648 = vmatprep.subr.bf16.mxu1 %v1659_v3  ;;  %v1670_v6 = vld [vmem:[%s2462_s0 + $0x40] sm:$0xff]   ;;  %v1671_v8 = vld [vmem:[%s2462_s0 + $0x48] sm:$0xff]   ;;  %v1686_v14 = vld [vmem:[%s2465_s3 + $0x54] ss:$8 sps:$4 sm:$0xff]  }
   0x5   :  { %v1683_v11 = vld [vmem:[%s2465_s3 + $0x64] ss:$8 sps:$4 sm:$0xff]   ;;  %v1681_v13 = vld [vmem:[%s2465_s3 + $0x60] ss:$8 sps:$4 sm:$0xff]   ;;  %v1672_v15 = vld [vmem:[%s2462_s0 + $0x50] sm:$0xff]  }
   0x6   :  { %v1684_v16 = vld [vmem:[%s2465_s3 + $0x50] ss:$8 sps:$4 sm:$0xff]   ;;  %v1689_v17 = vld [vmem:[%s2465_s3 + $0x44] ss:$8 sps:$4 sm:$0xff]   ;;  %v1687_v19 = vld [vmem:[%s2465_s3 + $0x40] ss:$8 sps:$4 sm:$0xff]  }
   0x7   :  { %239 = vmatpush1.bf16.msra.mxu0 %v1661_v4  ;;  %1650 = vmatpush1.bf16.msra.mxu1 %v1661_v4  ;;  %v1665_v18 = vld [vmem:[%s2462_s0 + $0x18] sm:$0xff]   ;;  %v1695_v23 = vld [vmem:[%s2465_s3 + $0x24] ss:$8 sps:$4 sm:$0xff]   ;;  %v1693_v25 = vld [vmem:[%s2465_s3 + $0x20] ss:$8 sps:$4 sm:$0xff]  }
   0x8   :  { %717 = vmatprep.subr.bf16.mxu1 %v1680_v10  ;;  %v1692_v20 = vld [vmem:[%s2465_s3 + $0x34] ss:$8 sps:$4 sm:$0xff]   ;;  %v1690_v22 = vld [vmem:[%s2465_s3 + $0x30] ss:$8 sps:$4 sm:$0xff]   ;;  %v1666_v24 = vld [vmem:[%s2462_s0 + $0x20] sm:$0xff]  }
   0x9   :  { %v1673_v21 = vld [vmem:[%s2462_s0 + $0x58] sm:$0xff]  }
   0xa   :  { %1534 = vmatmul.mubr.msk.bf16.vlgmr.msra.gmra.mxu0 %vm175_vm0, %v1662_v5  ;;  %1542 = vmatmul.mubr.msk.bf16.vlgmr.msra.gmra.mxu1 %vm175_vm0, %v1670_v6 }
   0xb   :  { %266 = vmatprep.mubr.bf16.mxu0 %v1748_v2  ;;  %346 = vmatprep.mubr.bf16.mxu1 %v1748_v2 }
   0xc   :  { %718 = vmatpush1.bf16.msra.mxu1 %v1678_v9 }
   0xd   :  { %719 = vmatprep.subr.bf16.mxu1 %v1683_v11 }
  0x10   :  { %720 = vmatpush1.bf16.msra.mxu1 %v1681_v13 }
  0x11   :  { %721 = vmatprep.subr.bf16.mxu1 %v1686_v14 }
  0x12   :  { %1535 = vmatmul.mubr.msk.bf16.gmra.mxu0 %vm175_vm0, %v1663_v7  ;;  %1543 = vmatmul.mubr.msk.bf16.gmra.mxu1 %vm175_vm0, %v1671_v8 }
  0x13   :  { %276 = vmatprep.mubr.bf16.mxu0 %v1748_v2  ;;  %356 = vmatprep.mubr.bf16.mxu1 %v1748_v2 }
  0x14   :  { %722 = vmatpush1.bf16.msra.mxu1 %v1684_v16 }
  0x15   :  { %723 = vmatprep.subr.bf16.mxu1 %v1689_v17 }
  0x18   :  { %724 = vmatpush1.bf16.msra.mxu1 %v1687_v19 }
  0x19   :  { %725 = vmatprep.subr.bf16.mxu1 %v1692_v20 }
  0x1a   :  { %1536 = vmatmul.mubr.msk.bf16.gmra.mxu0 %vm175_vm0, %v1664_v12  ;;  %1544 = vmatmul.mubr.msk.bf16.gmra.mxu1 %vm175_vm0, %v1672_v15 }
  0x1b   :  { %286 = vmatprep.mubr.bf16.mxu0 %v1748_v2  ;;  %366 = vmatprep.mubr.bf16.mxu1 %v1748_v2 }
  0x1c   :  { %726 = vmatpush1.bf16.msra.mxu1 %v1690_v22 }
  0x22   :  { %1537 = vmatmul.mubr.msk.bf16.gmra.mxu0 %vm175_vm0, %v1665_v18  ;;  %1545 = vmatmul.mubr.msk.bf16.gmra.mxu1 %vm175_vm0, %v1673_v21 }
  0x23   :  { %296 = vmatprep.mubr.bf16.mxu0 %v1748_v2  ;;  %376 = vmatprep.mubr.bf16.mxu1 %v1748_v2 }
  0x24   :  { %13 = vsyncpa [#allocation3], 0  ;;  %727 = vmatprep.subr.bf16.mxu1 %v1695_v23  ;;  %v1698_v26 = vld [vmem:[%s2465_s3 + $0x14] ss:$8 sps:$4 sm:$0xff]   ;;  %v1674_v27 = vld [vmem:[%s2462_s0 + $0x60] sm:$0xff]   ;;  %v65_v53 = vlaneseq  ;;  %v1749_v8 = vmov 0.0  }
  0x25   :  { %728 = vmatpush1.bf16.msra.mxu1 %v1693_v25  ;;  %v1696_v28 = vld [vmem:[%s2465_s3 + $0x10] ss:$8 sps:$4 sm:$0xff]   ;;  %v1701_v29 = vld [vmem:[%s2465_s3 + $0x4] ss:$8 sps:$4 sm:$0xff]   ;;  %v1699_v31 = vld [vmem:[%s2465_s3] ss:$8 sps:$4 sm:$0xff]   ;;  %1237 = vmatprep.subr.mxu0 %v1749_v8 }
  0x26   :  { %729 = vmatprep.subr.bf16.mxu1 %v1698_v26  ;;  %v1667_v30 = vld [vmem:[%s2462_s0 + $0x28] sm:$0xff]   ;;  %v1704_v32 = vld [vmem:[%s2465_s3 + $0xf4] ss:$8 sps:$4 sm:$0xff]   ;;  %v1702_v34 = vld [vmem:[%s2465_s3 + $0xf0] ss:$8 sps:$4 sm:$0xff]   ;;  %v1981_v54 = vshrl.u32 %v65_v53, 7 }
  0x27   :  { %v1675_v33 = vld [vmem:[%s2462_s0 + $0x68] sm:$0xff]   ;;  %v1668_v36 = vld [vmem:[%s2462_s0 + $0x30] sm:$0xff]   ;;  %v1669_v42 = vld [vmem:[%s2462_s0 + $0x38] sm:$0xff]  }
  0x28   :  { %v1707_v35 = vld [vmem:[%s2465_s3 + $0xe4] ss:$8 sps:$4 sm:$0xff]   ;;  %v1705_v37 = vld [vmem:[%s2465_s3 + $0xe0] ss:$8 sps:$4 sm:$0xff]   ;;  %v1710_v38 = vld [vmem:[%s2465_s3 + $0xd4] ss:$8 sps:$4 sm:$0xff]  }
  0x29   :  { %730 = vmatpush1.bf16.msra.mxu1 %v1696_v28  ;;  %v1676_v39 = vld [vmem:[%s2462_s0 + $0x70] sm:$0xff]   ;;  %v1713_v41 = vld [vmem:[%s2465_s3 + $0xc4] ss:$8 sps:$4 sm:$0xff]   ;;  %v1711_v43 = vld [vmem:[%s2465_s3 + $0xc0] ss:$8 sps:$4 sm:$0xff]   ;;  %v71_v55 = vsub.s32 1, %v1981_v54 }
  0x2a   :  { %1538 = vmatmul.mubr.msk.bf16.gmra.mxu0 %vm175_vm0, %v1666_v24  ;;  %1546 = vmatmul.mubr.msk.bf16.gmra.mxu1 %vm175_vm0, %v1674_v27  ;;  %v1708_v40 = vld [vmem:[%s2465_s3 + $0xd0] ss:$8 sps:$4 sm:$0xff]   ;;  %v1716_v44 = vld [vmem:[%s2465_s3 + $0xb4] ss:$8 sps:$4 sm:$0xff]   ;;  %v1719_v47 = vld [vmem:[%s2465_s3 + $0xa4] ss:$8 sps:$4 sm:$0xff]  }
  0x2b   :  { %306 = vmatprep.mubr.bf16.mxu0 %v1748_v2  ;;  %386 = vmatprep.mubr.bf16.mxu1 %v1748_v2  ;;  %v1677_v45 = vld [vmem:[%s2462_s0 + $0x78] sm:$0xff]   ;;  %v1717_v48 = vld [vmem:[%s2465_s3 + $0xa0] ss:$8 sps:$4 sm:$0xff]   ;;  %v1725_v51 = vld [vmem:[%s2465_s3 + $0x84] ss:$8 sps:$4 sm:$0xff]   ;;  %v67_v56 = vsub.s32 0, %v1981_v54 }
  0x2c   :  { %731 = vmatprep.subr.bf16.mxu1 %v1701_v29  ;;  %v1714_v46 = vld [vmem:[%s2465_s3 + $0xb0] ss:$8 sps:$4 sm:$0xff]   ;;  %v1722_v49 = vld [vmem:[%s2465_s3 + $0x94] ss:$8 sps:$4 sm:$0xff]   ;;  %v1723_v52 = vld [vmem:[%s2465_s3 + $0x80] ss:$8 sps:$4 sm:$0xff]  }
  0x2d   :  { %732 = vmatpush1.bf16.msra.mxu1 %v1699_v31  ;;  %v1720_v50 = vld [vmem:[%s2465_s3 + $0x90] ss:$8 sps:$4 sm:$0xff]   ;;  %v63_v57 = vld [vmem:[%s2464_s2] sm:$0x3]  ;;  %v1211_v15 = vld [vmem:[%s2466_s4 + $0x68] sm:$0xff] }
  0x2e   :  { %733 = vmatprep.subr.bf16.mxu1 %v1704_v32  ;;  %v1990_v59 = vrot.slane %v63_v57, %v71_v55  ;;  %v1994_v60 = vrot.slane %v63_v57, %v67_v56  ;;  %v1213_v5 = vld [vmem:[%s2466_s4 + $0x78] sm:$0xff]  ;;  %v1212_v9 = vld [vmem:[%s2466_s4 + $0x70] sm:$0xff]  ;;  %v1210_v20 = vld [vmem:[%s2466_s4 + $0x60] sm:$0xff] }
  0x2f   :  { %1238 = vmatpush1.msra.mxu0 %v1213_v5  ;;  %v1209_v26 = vld [vmem:[%s2466_s4 + $0x58] sm:$0xff]  ;;  %v1208_v31 = vld [vmem:[%s2466_s4 + $0x50] sm:$0xff] }
  0x30   :  { %1239 = vmatprep.subr.mxu0 %v1749_v8 }
  0x31   :  { %734 = vmatpush2.bf16.msra.mxu1 %v1702_v34  ;;  %1240 = vmatpush1.msra.mxu0 %v1212_v9 }
  0x32   :  { %1539 = vmatmul.mubr.msk.bf16.gmra.mxu0 %vm175_vm0, %v1667_v30  ;;  %1547 = vmatmul.mubr.msk.bf16.gmra.mxu1 %vm175_vm0, %v1675_v33 }
  0x33   :  { %316 = vmatprep.mubr.bf16.mxu0 %v1748_v2  ;;  %396 = vmatprep.mubr.bf16.mxu1 %v1748_v2 }
  0x34   :  { %735 = vmatprep.subr.bf16.mxu1 %v1707_v35  ;;  %1241 = vmatprep.subr.mxu0 %v1749_v8 }
  0x35   :  { %736 = vmatpush2.bf16.msra.mxu1 %v1705_v37  ;;  %1242 = vmatpush1.msra.mxu0 %v1211_v15  ;;  %v1207_v37 = vld [vmem:[%s2466_s4 + $0x48] sm:$0xff] }
  0x36   :  { %737 = vmatprep.subr.bf16.mxu1 %v1710_v38  ;;  %1243 = vmatprep.subr.mxu0 %v1749_v8 }
  0x37   :  { %1244 = vmatpush1.msra.mxu0 %v1210_v20 }
  0x38   :  { %1245 = vmatprep.subr.mxu0 %v1749_v8 }
  0x39   :  { %738 = vmatpush2.bf16.msra.mxu1 %v1708_v40  ;;  %1246 = vmatpush1.msra.mxu0 %v1209_v26 }
  0x3a   :  { %1540 = vmatmul.mubr.msk.bf16.gmra.mxu0 %vm175_vm0, %v1668_v36  ;;  %1548 = vmatmul.mubr.msk.bf16.gmra.mxu1 %vm175_vm0, %v1676_v39 }
  0x3b   :  { %326 = vmatprep.mubr.bf16.mxu0 %v1748_v2  ;;  %406 = vmatprep.mubr.bf16.mxu1 %v1748_v2 }
  0x3c   :  { %739 = vmatprep.subr.bf16.mxu1 %v1713_v41  ;;  %1247 = vmatprep.subr.mxu0 %v1749_v8  ;;  %v1206_v41 = vld [vmem:[%s2466_s4 + $0x40] sm:$0xff] }
  0x3d   :  { %740 = vmatpush2.bf16.msra.mxu1 %v1711_v43  ;;  %1248 = vmatpush1.msra.mxu0 %v1208_v31 }
  0x3e   :  { %741 = vmatprep.subr.bf16.mxu1 %v1716_v44  ;;  %1249 = vmatprep.subr.mxu0 %v1749_v8 }
  0x3f   :  { %1250 = vmatpush1.msra.mxu0 %v1207_v37  ;;  %v1229_v37 = vld [vmem:[%s2466_s4 + $0xf8] sm:$0xff] }
  0x40   :  { %1251 = vmatprep.subr.mxu0 %v1749_v8 }
  0x41   :  { %742 = vmatpush2.bf16.msra.mxu1 %v1714_v46  ;;  %1252 = vmatpush1.msra.mxu0 %v1206_v41  ;;  %v1228_v41 = vld [vmem:[%s2466_s4 + $0xf0] sm:$0xff] }
  0x42   :  { %1541 = vmatmul.mubr.msk.bf16.gmra.mxu0 %vm175_vm0, %v1669_v42  ;;  %1549 = vmatmul.mubr.msk.bf16.gmra.mxu1 %vm175_vm0, %v1677_v45 }
  0x43   :  { %743 = vmatprep.subr.bf16.mxu1 %v1719_v47  ;;  %v1205_v47 = vld [vmem:[%s2466_s4 + $0x38] sm:$0xff]  ;;  %1253 = vmatprep.subr.mxu0 %v1749_v8 }
  0x44   :  { %1254 = vmatpush1.msra.mxu0 %v1205_v47 }
  0x45   :  { %744 = vmatpush2.bf16.msra.mxu1 %v1717_v48  ;;  %1255 = vmatprep.subr.mxu0 %v1749_v8 }
  0x46   :  { %745 = vmatprep.subr.bf16.mxu1 %v1722_v49 }
  0x49   :  { %746 = vmatpush2.bf16.msra.mxu1 %v1720_v50 }
  0x4a   :  { %747 = vmatprep.subr.bf16.mxu1 %v1725_v51  ;;  %v1204_v51 = vld [vmem:[%s2466_s4 + $0x30] sm:$0xff] }
  0x4b   :  { %1256 = vmatpush1.msra.mxu0 %v1204_v51 }
  0x4c   :  { %1257 = vmatprep.subr.mxu0 %v1749_v8 }
  0x4d   :  { %748 = vmatpush2.bf16.msra.mxu1 %v1723_v52 }
  0xca   :  { %v258_v58 = vpop.f32.mrf.mxu0  ;;  %v1996_v62 = vpop.f32.mrf.mxu1 }
  0xcb   :  { %v259_v3 = vadd.f32 %v258_v58, %v1994_v60 }
  0xcc   :  { %v260_v61 = vpop.f32.mrf.mxu0  ;;  %v2000_v2 = vpop.f32.mrf.mxu1 }
  0xcd   :  { %v261_v0 = vadd.f32 %v260_v61, %v1990_v59  ;;  %v417_v16 = vmax.f32 %v259_v3, 0.0 }
  0xce   :  { %v262_v63 = vpop.f32.mrf.mxu0  ;;  %v2007_v7 = vpop.f32.mrf.mxu1 }
  0xcf   :  { %v263_v1 = vadd.f32 %v262_v63, %v1994_v60  ;;  %v418_v12 = vmax.f32 %v261_v0, 0.0  ;;  %v1203_v63 = vld [vmem:[%s2466_s4 + $0x28] sm:$0xff] }
  0xd0   :  { %v264_v4 = vpop.f32.mrf.mxu0  ;;  %v2013_v14 = vpop.f32.mrf.mxu1  ;;  %1258 = vmatpush1.msra.mxu0 %v1203_v63 }
  0xd1   :  { %v265_v6 = vadd.f32 %v264_v4, %v1990_v59  ;;  %v419_v10 = vmax.f32 %v263_v1, 0.0  ;;  %v1202_v4 = vld [vmem:[%s2466_s4 + $0x20] sm:$0xff]  ;;  %1259 = vmatprep.subr.mxu0 %v1749_v8 }
  0xd2   :  { %v268_v11 = vpop.f32.mrf.mxu0  ;;  %v2019_v19 = vpop.f32.mrf.mxu1  ;;  %1260 = vmatpush1.msra.mxu0 %v1202_v4 }
  0xd3   :  { %v420_v13 = vmax.f32 %v265_v6, 0.0  ;;  %v481_v21 = vpack.c.bf16 %v419_v10, %v417_v16  ;;  %v269_v27 = vadd.f32 %v268_v11, %v1994_v60  ;;  %1261 = vmatprep.subr.mxu0 %v1749_v8 }
  0xd4   :  { %v270_v17 = vpop.f32.mrf.mxu0  ;;  %v2027_v25 = vpop.f32.mrf.mxu1 }
  0xd5   :  { %v482_v18 = vpack.c.bf16 %v420_v13, %v418_v12  ;;  %v271_v23 = vadd.f32 %v270_v17, %v1990_v59  ;;  %v421_v38 = vmax.f32 %v269_v27, 0.0  ;;  %v1201_v12 = vld [vmem:[%s2466_s4 + $0x18] sm:$0xff]  ;;  %v1200_v17 = vld [vmem:[%s2466_s4 + $0x10] sm:$0xff] }
  0xd6   :  { %v272_v22 = vpop.f32.mrf.mxu0  ;;  %v2035_v30 = vpop.f32.mrf.mxu1  ;;  %1262 = vmatpush1.msra.mxu0 %v1201_v12 }
  0xd7   :  { %v273_v24 = vadd.f32 %v272_v22, %v1994_v60  ;;  %749 = vmatprep.mubr.bf16.mxu1 %v482_v18  ;;  %v422_v34 = vmax.f32 %v271_v23, 0.0  ;;  %1263 = vmatprep.subr.mxu0 %v1749_v8 }
  0xd8   :  { %v274_v28 = vpop.f32.mrf.mxu0  ;;  %750 = vmatmul.mubr.bf16.vlgmr.msra.gmra.mxu1 %v481_v21  ;;  %v2041_v36 = vpop.f32.mrf.mxu1  ;;  %1264 = vmatpush1.msra.mxu0 %v1200_v17 }
  0xd9   :  { %v275_v29 = vadd.f32 %v274_v28, %v1990_v59  ;;  %v423_v32 = vmax.f32 %v273_v24, 0.0  ;;  %v1199_v24 = vld [vmem:[%s2466_s4 + $0x8] sm:$0xff]  ;;  %1265 = vmatprep.subr.mxu0 %v1749_v8 }
  0xda   :  { %v278_v33 = vpop.f32.mrf.mxu0  ;;  %v2051_v44 = vpop.f32.mrf.mxu1  ;;  %1266 = vmatpush1.msra.mxu0 %v1199_v24 }
  0xdb   :  { %v424_v35 = vmax.f32 %v275_v29, 0.0  ;;  %v483_v42 = vpack.c.bf16 %v423_v32, %v421_v38  ;;  %v279_v48 = vadd.f32 %v278_v33, %v1994_v60  ;;  %v1198_v29 = vld [vmem:[%s2466_s4] sm:$0xff]  ;;  %1267 = vmatprep.subr.mxu0 %v1749_v8 }
  0xdc   :  { %v280_v39 = vpop.f32.mrf.mxu0  ;;  %v2065_v57 = vpop.f32.mrf.mxu1  ;;  %1268 = vmatpush1.msra.mxu0 %v1198_v29  ;;  %v1221_v29 = vld [vmem:[%s2466_s4 + $0xb8] sm:$0xff] }
  0xdd   :  { %v484_v40 = vpack.c.bf16 %v424_v35, %v422_v34  ;;  %v281_v45 = vadd.f32 %v280_v39, %v1990_v59  ;;  %v425_v0 = vmax.f32 %v279_v48, 0.0  ;;  %1269 = vmatprep.subr.mxu0 %v1749_v8  ;;  %v1227_v48 = vld [vmem:[%s2466_s4 + $0xe8] sm:$0xff] }
  0xde   :  { %v282_v43 = vpop.f32.mrf.mxu0  ;;  %v2075_v9 = vpop.f32.mrf.mxu1  ;;  %1270 = vmatpush2.msra.mxu0 %v1229_v37 }
  0xdf   :  { %v283_v46 = vadd.f32 %v282_v43, %v1994_v60  ;;  %759 = vmatprep.mubr.bf16.mxu1 %v484_v40  ;;  %v426_v58 = vmax.f32 %v281_v45, 0.0  ;;  %1271 = vmatprep.subr.mxu0 %v1749_v8 }
  0xe0   :  { %v284_v49 = vpop.f32.mrf.mxu0  ;;  %760 = vmatmul.mubr.bf16.gmra.mxu1 %v483_v42  ;;  %v2089_v21 = vpop.f32.mrf.mxu1  ;;  %1272 = vmatpush2.msra.mxu0 %v1228_v41 }
  0xe1   :  { %v285_v50 = vadd.f32 %v284_v49, %v1990_v59  ;;  %v427_v52 = vmax.f32 %v283_v46, 0.0  ;;  %1273 = vmatprep.subr.mxu0 %v1749_v8 }
  0xe2   :  { %v288_v53 = vpop.f32.mrf.mxu0  ;;  %v2099_v33 = vpop.f32.mrf.mxu1  ;;  %1274 = vmatpush2.msra.mxu0 %v1227_v48  ;;  %v341_v48 = vadd.f32 %v2000_v2, %v1990_v59 }
  0xe3   :  { %v428_v61 = vmax.f32 %v285_v50, 0.0  ;;  %v485_v5 = vpack.c.bf16 %v427_v52, %v425_v0  ;;  %v289_v13 = vadd.f32 %v288_v53, %v1994_v60  ;;  %v1226_v52 = vld [vmem:[%s2466_s4 + $0xe0] sm:$0xff]  ;;  %1275 = vmatprep.subr.mxu0 %v1749_v8 }
  0xe4   :  { %v290_v1 = vpop.f32.mrf.mxu0  ;;  %v2113_v45 = vpop.f32.mrf.mxu1  ;;  %1276 = vmatpush2.msra.mxu0 %v1226_v52 }
  0xe5   :  { %v486_v3 = vpack.c.bf16 %v428_v61, %v426_v58  ;;  %v291_v10 = vadd.f32 %v290_v1, %v1990_v59  ;;  %v429_v26 = vmax.f32 %v289_v13, 0.0  ;;  %v1225_v1 = vld [vmem:[%s2466_s4 + $0xd8] sm:$0xff]  ;;  %1277 = vmatprep.subr.mxu0 %v1749_v8 }
  0xe6   :  { %v292_v6 = vpop.f32.mrf.mxu0  ;;  %v2123_v61 = vpop.f32.mrf.mxu1  ;;  %1278 = vmatpush2.msra.mxu0 %v1225_v1 }
  0xe7   :  { %v293_v11 = vadd.f32 %v292_v6, %v1994_v60  ;;  %769 = vmatprep.mubr.bf16.mxu1 %v486_v3  ;;  %v430_v22 = vmax.f32 %v291_v10, 0.0  ;;  %v1224_v6 = vld [vmem:[%s2466_s4 + $0xd0] sm:$0xff]  ;;  %1279 = vmatprep.subr.mxu0 %v1749_v8 }
  0xe8   :  { %v294_v15 = vpop.f32.mrf.mxu0  ;;  %770 = vmatmul.mubr.bf16.gmra.mxu1 %v485_v5  ;;  %v2137_v12 = vpop.f32.mrf.mxu1  ;;  %1280 = vmatpush2.msra.mxu0 %v1224_v6 }
  0xe9   :  { %v295_v16 = vadd.f32 %v294_v15, %v1990_v59  ;;  %v431_v18 = vmax.f32 %v293_v11, 0.0  ;;  %1281 = vmatprep.subr.mxu0 %v1749_v8 }
  0xea   :  { %v298_v20 = vpop.f32.mrf.mxu0 }
  0xeb   :  { %v432_v23 = vmax.f32 %v295_v16, 0.0  ;;  %v487_v31 = vpack.c.bf16 %v431_v18, %v429_v26  ;;  %v299_v38 = vadd.f32 %v298_v20, %v1994_v60  ;;  %v1223_v16 = vld [vmem:[%s2466_s4 + $0xc8] sm:$0xff]  ;;  %v2147_v26 = vpop.f32.mrf.mxu1 }
  0xec   :  { %v300_v27 = vpop.f32.mrf.mxu0  ;;  %1282 = vmatpush2.msra.mxu0 %v1223_v16  ;;  %v351_v16 = vadd.f32 %v2027_v25, %v1990_v59 }
  0xed   :  { %v488_v28 = vpack.c.bf16 %v432_v23, %v430_v22  ;;  %v301_v34 = vadd.f32 %v300_v27, %v1990_v59  ;;  %v433_v49 = vmax.f32 %v299_v38, 0.0  ;;  %v1222_v22 = vld [vmem:[%s2466_s4 + $0xc0] sm:$0xff]  ;;  %1283 = vmatprep.subr.mxu0 %v1749_v8 }
  0xee   :  { %v302_v32 = vpop.f32.mrf.mxu0  ;;  %1284 = vmatpush2.msra.mxu0 %v1222_v22  ;;  %v343_v22 = vadd.f32 %v2007_v7, %v1994_v60  ;;  %v349_v7 = vadd.f32 %v2019_v19, %v1994_v60  ;;  %v1216_v19 = vld [vmem:[%s2466_s4 + $0x90] sm:$0xff] }
  0xef   :  { %v303_v35 = vadd.f32 %v302_v32, %v1994_v60  ;;  %779 = vmatprep.mubr.bf16.mxu1 %v488_v28  ;;  %v434_v46 = vmax.f32 %v301_v34, 0.0  ;;  %1285 = vmatprep.subr.mxu0 %v1749_v8 }
  0xf0   :  { %v304_v39 = vpop.f32.mrf.mxu0  ;;  %780 = vmatmul.mubr.bf16.gmra.mxu1 %v487_v31  ;;  %1286 = vmatpush2.msra.mxu0 %v1221_v29  ;;  %v451_v29 = vmax.f32 %v343_v22, 0.0 }
  0xf1   :  { %v305_v40 = vadd.f32 %v304_v39, %v1990_v59  ;;  %v435_v42 = vmax.f32 %v303_v35, 0.0  ;;  %v1220_v35 = vld [vmem:[%s2466_s4 + $0xb0] sm:$0xff]  ;;  %v2161_v39 = vpop.f32.mrf.mxu1  ;;  %1287 = vmatprep.subr.mxu0 %v1749_v8 }
  0xf2   :  { %v308_v43 = vpop.f32.mrf.mxu0  ;;  %1288 = vmatpush2.msra.mxu0 %v1220_v35 }
  0xf3   :  { %v436_v47 = vmax.f32 %v305_v40, 0.0  ;;  %v489_v53 = vpack.c.bf16 %v435_v42, %v433_v49  ;;  %v309_v3 = vadd.f32 %v308_v43, %v1994_v60  ;;  %v1219_v42 = vld [vmem:[%s2466_s4 + $0xa8] sm:$0xff]  ;;  %v345_v49 = vadd.f32 %v2013_v14, %v1990_v59  ;;  %1289 = vmatprep.subr.mxu0 %v1749_v8 }
  0xf4   :  { %v310_v50 = vpop.f32.mrf.mxu0  ;;  %1290 = vmatpush2.msra.mxu0 %v1219_v42 }
  0xf5   :  { %v490_v51 = vpack.c.bf16 %v436_v47, %v434_v46  ;;  %v311_v63 = vadd.f32 %v310_v50, %v1990_v59  ;;  %v437_v17 = vmax.f32 %v309_v3, 0.0  ;;  %v1218_v50 = vld [vmem:[%s2466_s4 + $0xa0] sm:$0xff]  ;;  %1291 = vmatprep.subr.mxu0 %v1749_v8  ;;  %v452_v3 = vmax.f32 %v345_v49, 0.0 }
  0xf6   :  { %v312_v58 = vpop.f32.mrf.mxu0  ;;  %1292 = vmatpush2.msra.mxu0 %v1218_v50  ;;  %v363_v49 = vadd.f32 %v2075_v9, %v1994_v60 }
  0xf7   :  { %v313_v0 = vadd.f32 %v312_v58, %v1994_v60  ;;  %789 = vmatprep.mubr.bf16.mxu1 %v490_v51  ;;  %v438_v13 = vmax.f32 %v311_v63, 0.0  ;;  %1293 = vmatprep.subr.mxu0 %v1749_v8 }
  0xf8   :  { %v314_v4 = vpop.f32.mrf.mxu0  ;;  %790 = vmatmul.mubr.bf16.gmra.mxu1 %v489_v53  ;;  %v2175_v53 = vpop.f32.mrf.mxu1 }
  0xf9   :  { %v315_v5 = vadd.f32 %v314_v4, %v1990_v59  ;;  %v439_v10 = vmax.f32 %v313_v0, 0.0  ;;  %v450_v0 = vmax.f32 %v341_v48, 0.0  ;;  %v359_v48 = vadd.f32 %v2051_v44, %v1994_v60 }
  0xfa   :  { %v318_v11 = vpop.f32.mrf.mxu0  ;;  %v381_v44 = vadd.f32 %v2161_v39, %v1990_v59 }
  0xfb   :  { %v440_v15 = vmax.f32 %v315_v5, 0.0  ;;  %v491_v23 = vpack.c.bf16 %v439_v10, %v437_v17  ;;  %v319_v31 = vadd.f32 %v318_v11, %v1994_v60  ;;  %v384_v5 = vpop.f32.mrf.mxu1  ;;  %v355_v17 = vadd.f32 %v2041_v36, %v1990_v59 }
  0xfc   :  { %v320_v18 = vpop.f32.mrf.mxu0  ;;  %v361_v36 = vadd.f32 %v2065_v57, %v1990_v59  ;;  %v385_v9 = vadd.f32 %v384_v5, %v1990_v59 }
  0xfd   :  { %v492_v20 = vpack.c.bf16 %v440_v15, %v438_v13  ;;  %v321_v27 = vadd.f32 %v320_v18, %v1990_v59  ;;  %v441_v43 = vmax.f32 %v319_v31, 0.0  ;;  %v498_v15 = vpack.c.bf16 %v452_v3, %v450_v0 }
  0xfe   :  { %v322_v24 = vpop.f32.mrf.mxu0  ;;  %v339_v18 = vadd.f32 %v1996_v62, %v1994_v60  ;;  %v365_v62 = vadd.f32 %v2089_v21, %v1990_v59  ;;  %v373_v0 = vadd.f32 %v2123_v61, %v1994_v60  ;;  %v466_v3 = vmax.f32 %v381_v44, 0.0 }
  0xff   :  { %v323_v28 = vadd.f32 %v322_v24, %v1994_v60  ;;  %799 = vmatprep.mubr.bf16.mxu1 %v492_v20  ;;  %v442_v40 = vmax.f32 %v321_v27, 0.0  ;;  %v454_v24 = vmax.f32 %v351_v16, 0.0  ;;  %v456_v27 = vmax.f32 %v355_v17, 0.0 }
 0x100   :  { %v324_v32 = vpop.f32.mrf.mxu0  ;;  %800 = vmatmul.mubr.bf16.gmra.mxu1 %v491_v23  ;;  %v2191_v23 = vpop.f32.mrf.mxu1  ;;  %v460_v57 = vmax.f32 %v365_v62, 0.0  ;;  %v383_v61 = vadd.f32 %v2175_v53, %v1994_v60 }
 0x101   :  { %v325_v34 = vadd.f32 %v324_v32, %v1990_v59  ;;  %v443_v37 = vmax.f32 %v323_v28, 0.0  ;;  %v449_v28 = vmax.f32 %v339_v18, 0.0  ;;  %v500_v31 = vpack.c.bf16 %v456_v27, %v454_v24 }
 0x102   :  { %v328_v38 = vpop.f32.mrf.mxu0  ;;  %v390_v25 = vpop.f32.mrf.mxu1  ;;  %v467_v22 = vmax.f32 %v383_v61, 0.0 }
 0x103   :  { %v444_v41 = vmax.f32 %v325_v34, 0.0  ;;  %v493_v51 = vpack.c.bf16 %v443_v37, %v441_v43  ;;  %v329_v2 = vadd.f32 %v328_v38, %v1994_v60  ;;  %v497_v32 = vpack.c.bf16 %v451_v29, %v449_v28  ;;  %v1217_v37 = vld [vmem:[%s2466_s4 + $0x98] sm:$0xff] }
 0x104   :  { %v330_v46 = vpop.f32.mrf.mxu0  ;;  %v353_v34 = vadd.f32 %v2035_v30, %v1994_v60  ;;  %v2201_v35 = vpop.f32.mrf.mxu1  ;;  %v458_v38 = vmax.f32 %v361_v36, 0.0  ;;  %1294 = vmatpush2.msra.mxu0 %v1217_v37  ;;  %v1215_v30 = vld [vmem:[%s2466_s4 + $0x88] sm:$0xff]  ;;  %v371_v43 = vadd.f32 %v2113_v45, %v1990_v59  ;;  %v391_v39 = vadd.f32 %v390_v25, %v1990_v59 }
 0x105   :  { %v494_v47 = vpack.c.bf16 %v444_v41, %v442_v40  ;;  %v331_v58 = vadd.f32 %v330_v46, %v1990_v59  ;;  %v445_v11 = vmax.f32 %v329_v2, 0.0  ;;  %v453_v40 = vmax.f32 %v349_v7, 0.0  ;;  %1295 = vmatprep.subr.mxu0 %v1749_v8 }
 0x106   :  { %v332_v52 = vpop.f32.mrf.mxu0  ;;  %v455_v21 = vmax.f32 %v353_v34, 0.0  ;;  %v394_v41 = vpop.f32.mrf.mxu1  ;;  %1296 = vmatpush2.msra.mxu0 %v1216_v19  ;;  %v502_v42 = vpack.c.bf16 %v460_v57, %v458_v38  ;;  %v375_v46 = vadd.f32 %v2137_v12, %v1990_v59  ;;  %v462_v45 = vmax.f32 %v371_v43, 0.0 }
 0x107   :  { %v333_v63 = vadd.f32 %v332_v52, %v1994_v60  ;;  %809 = vmatprep.mubr.bf16.mxu1 %v494_v47  ;;  %v446_v6 = vmax.f32 %v331_v58, 0.0  ;;  %1297 = vmatprep.subr.mxu0 %v1749_v8  ;;  %v457_v52 = vmax.f32 %v359_v48, 0.0  ;;  %v459_v58 = vmax.f32 %v363_v49, 0.0 }
 0x108   :  { %v334_v14 = vpop.f32.mrf.mxu0  ;;  %810 = vmatmul.mubr.bf16.gmra.mxu1 %v493_v51  ;;  %1298 = vmatpush2.msra.mxu0 %v1215_v30  ;;  %v499_v47 = vpack.c.bf16 %v455_v21, %v453_v40  ;;  %v398_v50 = vpop.f32.mrf.mxu1  ;;  %v1214_v51 = vld [vmem:[%s2466_s4 + $0x80] sm:$0xff]  ;;  %v464_v12 = vmax.f32 %v375_v46, 0.0  ;;  %v395_v5 = vadd.f32 %v394_v41, %v1990_v59  ;;  %v470_v17 = vmax.f32 %v391_v39, 0.0 }
 0x109   :  { %v335_v1 = vadd.f32 %v334_v14, %v1990_v59  ;;  %v447_v4 = vmax.f32 %v333_v63, 0.0  ;;  %1299 = vmatprep.subr.mxu0 %v1749_v8  ;;  %v501_v14 = vpack.c.bf16 %v459_v58, %v457_v52  ;;  %v369_v8 = vadd.f32 %v2099_v33, %v1994_v60 }
 0x10a   :  { %1300 = vmatpush2.msra.mxu0 %v1214_v51  ;;  %v400_v63 = vpop.f32.mrf.mxu1  ;;  %v504_v2 = vpack.c.bf16 %v464_v12, %v462_v45  ;;  %v379_v33 = vadd.f32 %v2147_v26, %v1994_v60  ;;  %v472_v18 = vmax.f32 %v395_v5, 0.0  ;;  %v389_v26 = vadd.f32 %v2191_v23, %v1994_v60 }
 0x10b   :  { %v448_v10 = vmax.f32 %v335_v1, 0.0  ;;  %v495_v20 = vpack.c.bf16 %v447_v4, %v445_v11  ;;  %v468_v4 = vmax.f32 %v385_v9, 0.0  ;;  %v401_v28 = vadd.f32 %v400_v63, %v1990_v59 }
 0x10c   :  { %v402_v1 = vpop.f32.mrf.mxu1  ;;  %v508_v27 = vpack.c.bf16 %v472_v18, %v470_v17  ;;  %v393_v53 = vadd.f32 %v2201_v35, %v1994_v60  ;;  %v399_v21 = vadd.f32 %v398_v50, %v1994_v60  ;;  %v545_v50 = vld [vmem:[%s2464_s2 + $0x2] sm:$0x3]  ;;  %s1750_s2 = smov [#allocation2]  }
 0x10d   :  { %v496_v13 = vpack.c.bf16 %v448_v10, %v446_v6  ;;  %v461_v6 = vmax.f32 %v369_v8, 0.0  ;;  %v463_v10 = vmax.f32 %v373_v0, 0.0  ;;  %v474_v36 = vmax.f32 %v401_v28, 0.0  ;;  %s1499_s21 = sshll.u32 %s1750_s2, 4  ;;  %s1500_s21 = int_to_ptr.vmem [resolvable:$true] %s1499_s21 }
 0x10e   :  { %v404_v11 = vpop.f32.mrf.mxu1  ;;  %v471_v7 = vmax.f32 %v393_v53, 0.0  ;;  %v403_v23 = vadd.f32 %v402_v1, %v1994_v60  ;;  %v473_v19 = vmax.f32 %v399_v21, 0.0  ;;  %v2256_v51 = vrot.slane %v545_v50, %v67_v56  ;;  %s1726_s0 = scalar_lea.vmem %s1500_s21, 4096  ;;  %p1731_p1 = scmp.lt.s32.totalorder %s1500_s21, %s1500_s21 }
 0x10f   :  { %819 = vmatprep.mubr.bf16.mxu1 %v496_v13  ;;  %v506_v13 = vpack.c.bf16 %v468_v4, %v466_v3  ;;  %v405_v29 = vadd.f32 %v404_v11, %v1990_v59  ;;  %v2260_v45 = vrot.slane %v545_v50, %v71_v55  ;;  %p1727_p0 = scmp.ne.s32.totalorder %s1500_s21, %s1726_s0  ;;  %p1732_p2 = scmp.lt.s32.totalorder %s1726_s0, %s1726_s0 }
 0x110   :  { %820 = vmatmul.mubr.bf16.gmra.mxu1 %v495_v20  ;;  %v408_v16 = vpop.f32.mrf.mxu1  ;;  %v465_v20 = vmax.f32 %v379_v33, 0.0  ;;  %v475_v30 = vmax.f32 %v403_v23, 0.0 }
 0x111   :  { %829 = vmatprep.mubr.bf16.mxu1 %v498_v15  ;;  %v503_v15 = vpack.c.bf16 %v463_v10, %v461_v6  ;;  %v476_v62 = vmax.f32 %v405_v29, 0.0  ;;  %v409_v46 = vadd.f32 %v408_v16, %v1994_v60  ;;  %p1733_p3 = por %p1732_p2, %p1731_p1 }
 0x112   :  { %v410_v24 = vpop.f32.mrf.mxu1  ;;  %v505_v25 = vpack.c.bf16 %v467_v22, %v465_v20  ;;  %v509_v43 = vpack.c.bf16 %v475_v30, %v473_v19 }
 0x113   :  { %v510_v37 = vpack.c.bf16 %v476_v62, %v474_v36  ;;  %v411_v38 = vadd.f32 %v410_v24, %v1990_v59  ;;  %p1734_p4 = pnand %p1733_p3, %p1727_p0 }
 0x115   :  { %v478_v35 = vmax.f32 %v411_v38, 0.0 }
 0x118   :  { %830 = vmatmul.mubr.bf16.gmra.mxu1 %v497_v32  ;;  %v469_v32 = vmax.f32 %v389_v26, 0.0 }
 0x119   :  { %839 = vmatprep.mubr.bf16.mxu1 %v500_v31  ;;  %v412_v31 = vpop.f32.mrf.mxu1 }
 0x11a   :  { %v507_v40 = vpack.c.bf16 %v471_v7, %v469_v32 }
 0x11b   :  { %v414_v34 = vpop.f32.mrf.mxu1 }
 0x11c   :  { %v415_v57 = vadd.f32 %v414_v34, %v1990_v59  ;;  %v477_v59 = vmax.f32 %v409_v46, 0.0 }
 0x11e   :  { %v480_v41 = vmax.f32 %v415_v57, 0.0 }
 0x120   :  { %840 = vmatmul.mubr.bf16.gmra.mxu1 %v499_v47  ;;  %v413_v47 = vadd.f32 %v412_v31, %v1994_v60 }
 0x121   :  { %849 = vmatprep.mubr.bf16.mxu1 %v502_v42  ;;  %v512_v42 = vpack.c.bf16 %v480_v41, %v478_v35 }
 0x122   :  { %v479_v48 = vmax.f32 %v413_v47, 0.0 }
 0x124   :  { %v511_v49 = vpack.c.bf16 %v479_v48, %v477_v59 }
 0x128   :  { %850 = vmatmul.mubr.bf16.gmra.mxu1 %v501_v14 }
 0x129   :  { %859 = vmatprep.mubr.bf16.mxu1 %v504_v2 }
 0x130   :  { %860 = vmatmul.mubr.bf16.gmra.mxu1 %v503_v15 }
 0x131   :  { %869 = vmatprep.mubr.bf16.mxu1 %v506_v13 }
 0x138   :  { %870 = vmatmul.mubr.bf16.gmra.mxu1 %v505_v25 }
 0x139   :  { %879 = vmatprep.mubr.bf16.mxu1 %v508_v27 }
 0x140   :  { %880 = vmatmul.mubr.bf16.gmra.mxu1 %v507_v40 }
 0x141   :  { %889 = vmatprep.mubr.bf16.mxu1 %v510_v37 }
 0x148   :  { %890 = vmatmul.mubr.bf16.gmra.mxu1 %v509_v43 }
 0x149   :  { %899 = vmatprep.mubr.bf16.mxu1 %v512_v42 }
 0x150   :  { %900 = vmatmul.mubr.bf16.gmra.mxu1 %v511_v49 }
 0x198   :  { %v751_v12 = vpop.f32.mrf.mxu1 }
 0x199   :  { %v752_v60 = vadd.f32 %v751_v12, %v2256_v51 }
 0x19a   :  { %v753_v52 = vpop.f32.mrf.mxu1 }
 0x19b   :  { %v754_v58 = vadd.f32 %v753_v52, %v2260_v45  ;;  %v910_v2 = vmax.f32 %v752_v60, 0.0 }
 0x19c   :  { %v755_v63 = vpop.f32.mrf.mxu1 }
 0x19d   :  { %v911_v44 = vmax.f32 %v754_v58, 0.0  ;;  %v756_v9 = vadd.f32 %v755_v63, %v2256_v51 }
 0x19e   :  { %v757_v14 = vpop.f32.mrf.mxu1 }
 0x19f   :  { %v1615_v8 = vpack.c.bf16 %v911_v44, %v910_v2  ;;  %v758_v56 = vadd.f32 %v757_v14, %v2260_v45  ;;  %1301 = vmatprep.mubr.f32.mxu0 %v911_v44  ;;  %v912_v54 = vmax.f32 %v756_v9, 0.0 }
 0x1a0   :  { %v761_v0 = vpop.f32.mrf.mxu1  ;;  %1302 = vmatmul.mubr.f32.vlgmr.msra.gmra.mxu0 %v910_v2 }
 0x1a1   :  { %1166 = vst [vmem:[#allocation2] sm:$0xff] %v1615_v8  ;;  %v913_v55 = vmax.f32 %v758_v56, 0.0  ;;  %v762_v1 = vadd.f32 %v761_v0, %v2256_v51 }
 0x1a2   :  { %v763_v3 = vpop.f32.mrf.mxu1 }
 0x1a3   :  { %v1616_v4 = vpack.c.bf16 %v913_v55, %v912_v54  ;;  %v764_v6 = vadd.f32 %v763_v3, %v2260_v45  ;;  %1306 = vmatprep.mubr.f32.mxu0 %v913_v55  ;;  %v914_v11 = vmax.f32 %v762_v1, 0.0 }
 0x1a4   :  { %v765_v10 = vpop.f32.mrf.mxu1  ;;  %1307 = vmatmul.mubr.f32.gmra.mxu0 %v912_v54 }
 0x1a5   :  { %1167 = vst [vmem:[#allocation2 + $0x8] sm:$0xff] %v1616_v4  ;;  %v915_v13 = vmax.f32 %v764_v6, 0.0  ;;  %v766_v39 = vadd.f32 %v765_v10, %v2256_v51 }
 0x1a6   :  { %v767_v5 = vpop.f32.mrf.mxu1 }
 0x1a7   :  { %v1617_v15 = vpack.c.bf16 %v915_v13, %v914_v11  ;;  %v768_v33 = vadd.f32 %v767_v5, %v2260_v45  ;;  %1311 = vmatprep.mubr.f32.mxu0 %v915_v13  ;;  %v916_v16 = vmax.f32 %v766_v39, 0.0 }
 0x1a8   :  { %v771_v61 = vpop.f32.mrf.mxu1  ;;  %1312 = vmatmul.mubr.f32.gmra.mxu0 %v914_v11 }
 0x1a9   :  { %1168 = vst [vmem:[#allocation2 + $0x10] sm:$0xff] %v1617_v15  ;;  %v917_v17 = vmax.f32 %v768_v33, 0.0  ;;  %v772_v18 = vadd.f32 %v771_v61, %v2256_v51 }
 0x1aa   :  { %v773_v20 = vpop.f32.mrf.mxu1 }
 0x1ab   :  { %v1618_v22 = vpack.c.bf16 %v917_v17, %v916_v16  ;;  %v774_v24 = vadd.f32 %v773_v20, %v2260_v45  ;;  %1316 = vmatprep.mubr.f32.mxu0 %v917_v17  ;;  %v918_v28 = vmax.f32 %v772_v18, 0.0 }
 0x1ac   :  { %v775_v27 = vpop.f32.mrf.mxu1  ;;  %1317 = vmatmul.mubr.f32.gmra.mxu0 %v916_v16 }
 0x1ad   :  { %1169 = vst [vmem:[#allocation2 + $0x18] sm:$0xff] %v1618_v22  ;;  %v919_v29 = vmax.f32 %v774_v24, 0.0  ;;  %v776_v25 = vadd.f32 %v775_v27, %v2256_v51 }
 0x1ae   :  { %v777_v26 = vpop.f32.mrf.mxu1 }
 0x1af   :  { %v1619_v53 = vpack.c.bf16 %v919_v29, %v918_v28  ;;  %v778_v31 = vadd.f32 %v777_v26, %v2260_v45  ;;  %1321 = vmatprep.mubr.f32.mxu0 %v919_v29  ;;  %v920_v62 = vmax.f32 %v776_v25, 0.0 }
 0x1b0   :  { %v781_v36 = vpop.f32.mrf.mxu1  ;;  %1322 = vmatmul.mubr.f32.gmra.mxu0 %v918_v28 }
 0x1b1   :  { %1170 = vst [vmem:[#allocation2 + $0x20] sm:$0xff] %v1619_v53  ;;  %v921_v32 = vmax.f32 %v778_v31, 0.0  ;;  %v782_v7 = vadd.f32 %v781_v36, %v2256_v51 }
 0x1b2   :  { %v783_v34 = vpop.f32.mrf.mxu1 }
 0x1b3   :  { %v1620_v37 = vpack.c.bf16 %v921_v32, %v920_v62  ;;  %v784_v38 = vadd.f32 %v783_v34, %v2260_v45  ;;  %1326 = vmatprep.mubr.f32.mxu0 %v921_v32  ;;  %v922_v40 = vmax.f32 %v782_v7, 0.0 }
 0x1b4   :  { %v785_v57 = vpop.f32.mrf.mxu1  ;;  %1327 = vmatmul.mubr.f32.gmra.mxu0 %v920_v62 }
 0x1b5   :  { %1171 = vst [vmem:[#allocation2 + $0x28] sm:$0xff] %v1620_v37  ;;  %v923_v21 = vmax.f32 %v784_v38, 0.0  ;;  %v786_v23 = vadd.f32 %v785_v57, %v2256_v51 }
 0x1b6   :  { %v787_v35 = vpop.f32.mrf.mxu1 }
 0x1b7   :  { %v1621_v41 = vpack.c.bf16 %v923_v21, %v922_v40  ;;  %v788_v19 = vadd.f32 %v787_v35, %v2260_v45  ;;  %1331 = vmatprep.mubr.f32.mxu0 %v923_v21  ;;  %v924_v42 = vmax.f32 %v786_v23, 0.0 }
 0x1b8   :  { %v791_v30 = vpop.f32.mrf.mxu1  ;;  %1332 = vmatmul.mubr.f32.gmra.mxu0 %v922_v40 }
 0x1b9   :  { %1172 = vst [vmem:[#allocation2 + $0x30] sm:$0xff] %v1621_v41  ;;  %v925_v43 = vmax.f32 %v788_v19, 0.0  ;;  %v792_v46 = vadd.f32 %v791_v30, %v2256_v51 }
 0x1ba   :  { %v793_v47 = vpop.f32.mrf.mxu1 }
 0x1bb   :  { %v1622_v59 = vpack.c.bf16 %v925_v43, %v924_v42  ;;  %v794_v48 = vadd.f32 %v793_v47, %v2260_v45  ;;  %1336 = vmatprep.mubr.f32.mxu0 %v925_v43  ;;  %v926_v50 = vmax.f32 %v792_v46, 0.0 }
 0x1bc   :  { %v795_v49 = vpop.f32.mrf.mxu1  ;;  %1337 = vmatmul.mubr.f32.gmra.mxu0 %v924_v42 }
 0x1bd   :  { %1173 = vst [vmem:[#allocation2 + $0x38] sm:$0xff] %v1622_v59  ;;  %v927_v12 = vmax.f32 %v794_v48, 0.0  ;;  %v796_v60 = vadd.f32 %v795_v49, %v2256_v51 }
 0x1be   :  { %v797_v52 = vpop.f32.mrf.mxu1 }
 0x1bf   :  { %v1623_v58 = vpack.c.bf16 %v927_v12, %v926_v50  ;;  %v798_v63 = vadd.f32 %v797_v52, %v2260_v45  ;;  %1341 = vmatprep.mubr.f32.mxu0 %v927_v12  ;;  %v928_v44 = vmax.f32 %v796_v60, 0.0 }
 0x1c0   :  { %v801_v2 = vpop.f32.mrf.mxu1  ;;  %1342 = vmatmul.mubr.f32.gmra.mxu0 %v926_v50 }
 0x1c1   :  { %1174 = vst [vmem:[#allocation2 + $0x40] sm:$0xff] %v1623_v58  ;;  %v929_v9 = vmax.f32 %v798_v63, 0.0  ;;  %v802_v14 = vadd.f32 %v801_v2, %v2256_v51 }
 0x1c2   :  { %v803_v8 = vpop.f32.mrf.mxu1 }
 0x1c3   :  { %v1624_v56 = vpack.c.bf16 %v929_v9, %v928_v44  ;;  %v804_v0 = vadd.f32 %v803_v8, %v2260_v45  ;;  %1346 = vmatprep.mubr.f32.mxu0 %v929_v9  ;;  %v930_v55 = vmax.f32 %v802_v14, 0.0 }
 0x1c4   :  { %v805_v54 = vpop.f32.mrf.mxu1  ;;  %1347 = vmatmul.mubr.f32.gmra.mxu0 %v928_v44 }
 0x1c5   :  { %1175 = vst [vmem:[#allocation2 + $0x48] sm:$0xff] %v1624_v56  ;;  %v931_v1 = vmax.f32 %v804_v0, 0.0  ;;  %v806_v3 = vadd.f32 %v805_v54, %v2256_v51 }
 0x1c6   :  { %v807_v4 = vpop.f32.mrf.mxu1 }
 0x1c7   :  { %v1625_v6 = vpack.c.bf16 %v931_v1, %v930_v55  ;;  %v808_v10 = vadd.f32 %v807_v4, %v2260_v45  ;;  %1351 = vmatprep.mubr.f32.mxu0 %v931_v1  ;;  %v932_v13 = vmax.f32 %v806_v3, 0.0 }
 0x1c8   :  { %v811_v11 = vpop.f32.mrf.mxu1  ;;  %1352 = vmatmul.mubr.f32.gmra.mxu0 %v930_v55 }
 0x1c9   :  { %1176 = vst [vmem:[#allocation2 + $0x50] sm:$0xff] %v1625_v6  ;;  %v933_v39 = vmax.f32 %v808_v10, 0.0  ;;  %v812_v5 = vadd.f32 %v811_v11, %v2256_v51 }
 0x1ca   :  { %v813_v15 = vpop.f32.mrf.mxu1 }
 0x1cb   :  { %v1626_v33 = vpack.c.bf16 %v933_v39, %v932_v13  ;;  %v814_v61 = vadd.f32 %v813_v15, %v2260_v45  ;;  %1356 = vmatprep.mubr.f32.mxu0 %v933_v39  ;;  %v934_v17 = vmax.f32 %v812_v5, 0.0 }
 0x1cc   :  { %v815_v16 = vpop.f32.mrf.mxu1  ;;  %1357 = vmatmul.mubr.f32.gmra.mxu0 %v932_v13 }
 0x1cd   :  { %1177 = vst [vmem:[#allocation2 + $0x58] sm:$0xff] %v1626_v33  ;;  %v935_v18 = vmax.f32 %v814_v61, 0.0  ;;  %v816_v20 = vadd.f32 %v815_v16, %v2256_v51 }
 0x1ce   :  { %v817_v22 = vpop.f32.mrf.mxu1 }
 0x1cf   :  { %v1627_v24 = vpack.c.bf16 %v935_v18, %v934_v17  ;;  %v818_v27 = vadd.f32 %v817_v22, %v2260_v45  ;;  %1361 = vmatprep.mubr.f32.mxu0 %v935_v18  ;;  %v936_v29 = vmax.f32 %v816_v20, 0.0 }
 0x1d0   :  { %v821_v28 = vpop.f32.mrf.mxu1  ;;  %1362 = vmatmul.mubr.f32.gmra.mxu0 %v934_v17 }
 0x1d1   :  { %1178 = vst [vmem:[#allocation2 + $0x60] sm:$0xff] %v1627_v24  ;;  %v937_v25 = vmax.f32 %v818_v27, 0.0  ;;  %v822_v26 = vadd.f32 %v821_v28, %v2256_v51 }
 0x1d2   :  { %v823_v53 = vpop.f32.mrf.mxu1 }
 0x1d3   :  { %v1628_v31 = vpack.c.bf16 %v937_v25, %v936_v29  ;;  %v824_v36 = vadd.f32 %v823_v53, %v2260_v45  ;;  %1366 = vmatprep.mubr.f32.mxu0 %v937_v25  ;;  %v938_v32 = vmax.f32 %v822_v26, 0.0 }
 0x1d4   :  { %v825_v62 = vpop.f32.mrf.mxu1  ;;  %1367 = vmatmul.mubr.f32.gmra.mxu0 %v936_v29 }
 0x1d5   :  { %1179 = vst [vmem:[#allocation2 + $0x68] sm:$0xff] %v1628_v31  ;;  %v939_v7 = vmax.f32 %v824_v36, 0.0  ;;  %v826_v34 = vadd.f32 %v825_v62, %v2256_v51 }
 0x1d6   :  { %v827_v37 = vpop.f32.mrf.mxu1 }
 0x1d7   :  { %v1629_v38 = vpack.c.bf16 %v939_v7, %v938_v32  ;;  %v828_v57 = vadd.f32 %v827_v37, %v2260_v45  ;;  %1371 = vmatprep.mubr.f32.mxu0 %v939_v7  ;;  %v940_v21 = vmax.f32 %v826_v34, 0.0 }
 0x1d8   :  { %v831_v40 = vpop.f32.mrf.mxu1  ;;  %1372 = vmatmul.mubr.f32.gmra.mxu0 %v938_v32 }
 0x1d9   :  { %1180 = vst [vmem:[#allocation2 + $0x70] sm:$0xff] %v1629_v38  ;;  %v941_v23 = vmax.f32 %v828_v57, 0.0  ;;  %v832_v35 = vadd.f32 %v831_v40, %v2256_v51 }
 0x1da   :  { %v833_v41 = vpop.f32.mrf.mxu1 }
 0x1db   :  { %v1630_v19 = vpack.c.bf16 %v941_v23, %v940_v21  ;;  %v834_v30 = vadd.f32 %v833_v41, %v2260_v45  ;;  %1376 = vmatprep.mubr.f32.mxu0 %v941_v23  ;;  %v942_v43 = vmax.f32 %v832_v35, 0.0 }
 0x1dc   :  { %v835_v42 = vpop.f32.mrf.mxu1  ;;  %1377 = vmatmul.mubr.f32.gmra.mxu0 %v940_v21 }
 0x1dd   :  { %1181 = vst [vmem:[#allocation2 + $0x78] sm:$0xff] %v1630_v19  ;;  %v943_v46 = vmax.f32 %v834_v30, 0.0  ;;  %v836_v47 = vadd.f32 %v835_v42, %v2256_v51 }
 0x1de   :  { %v837_v59 = vpop.f32.mrf.mxu1 }
 0x1df   :  { %v1631_v48 = vpack.c.bf16 %v943_v46, %v942_v43  ;;  %v838_v49 = vadd.f32 %v837_v59, %v2260_v45  ;;  %1381 = vmatprep.mubr.f32.mxu0 %v943_v46  ;;  %v944_v12 = vmax.f32 %v836_v47, 0.0 }
 0x1e0   :  { %v841_v50 = vpop.f32.mrf.mxu1  ;;  %1382 = vmatmul.mubr.f32.gmra.mxu0 %v942_v43 }
 0x1e1   :  { %1182 = vst [vmem:[#allocation2 + $0x80] sm:$0xff] %v1631_v48  ;;  %v945_v60 = vmax.f32 %v838_v49, 0.0  ;;  %v842_v52 = vadd.f32 %v841_v50, %v2256_v51 }
 0x1e2   :  { %v843_v58 = vpop.f32.mrf.mxu1 }
 0x1e3   :  { %v1632_v63 = vpack.c.bf16 %v945_v60, %v944_v12  ;;  %v844_v2 = vadd.f32 %v843_v58, %v2260_v45  ;;  %1386 = vmatprep.mubr.f32.mxu0 %v945_v60  ;;  %v946_v9 = vmax.f32 %v842_v52, 0.0 }
 0x1e4   :  { %v845_v44 = vpop.f32.mrf.mxu1  ;;  %1387 = vmatmul.mubr.f32.gmra.mxu0 %v944_v12 }
 0x1e5   :  { %1183 = vst [vmem:[#allocation2 + $0x88] sm:$0xff] %v1632_v63  ;;  %v947_v14 = vmax.f32 %v844_v2, 0.0  ;;  %v846_v8 = vadd.f32 %v845_v44, %v2256_v51 }
 0x1e6   :  { %v847_v56 = vpop.f32.mrf.mxu1 }
 0x1e7   :  { %v1633_v0 = vpack.c.bf16 %v947_v14, %v946_v9  ;;  %v848_v54 = vadd.f32 %v847_v56, %v2260_v45  ;;  %1391 = vmatprep.mubr.f32.mxu0 %v947_v14  ;;  %v948_v1 = vmax.f32 %v846_v8, 0.0 }
 0x1e8   :  { %v851_v55 = vpop.f32.mrf.mxu1  ;;  %1392 = vmatmul.mubr.f32.gmra.mxu0 %v946_v9 }
 0x1e9   :  { %1184 = vst [vmem:[#allocation2 + $0x90] sm:$0xff] %v1633_v0  ;;  %v949_v3 = vmax.f32 %v848_v54, 0.0  ;;  %v852_v4 = vadd.f32 %v851_v55, %v2256_v51 }
 0x1ea   :  { %v853_v6 = vpop.f32.mrf.mxu1 }
 0x1eb   :  { %v1634_v10 = vpack.c.bf16 %v949_v3, %v948_v1  ;;  %v854_v11 = vadd.f32 %v853_v6, %v2260_v45  ;;  %1396 = vmatprep.mubr.f32.mxu0 %v949_v3  ;;  %v950_v39 = vmax.f32 %v852_v4, 0.0 }
 0x1ec   :  { %v855_v13 = vpop.f32.mrf.mxu1  ;;  %1397 = vmatmul.mubr.f32.gmra.mxu0 %v948_v1 }
 0x1ed   :  { %1185 = vst [vmem:[#allocation2 + $0x98] sm:$0xff] %v1634_v10  ;;  %v951_v5 = vmax.f32 %v854_v11, 0.0  ;;  %v856_v15 = vadd.f32 %v855_v13, %v2256_v51 }
 0x1ee   :  { %v857_v33 = vpop.f32.mrf.mxu1 }
 0x1ef   :  { %v1635_v61 = vpack.c.bf16 %v951_v5, %v950_v39  ;;  %v858_v16 = vadd.f32 %v857_v33, %v2260_v45  ;;  %1401 = vmatprep.mubr.f32.mxu0 %v951_v5  ;;  %v952_v18 = vmax.f32 %v856_v15, 0.0 }
 0x1f0   :  { %v861_v17 = vpop.f32.mrf.mxu1  ;;  %1402 = vmatmul.mubr.f32.gmra.mxu0 %v950_v39 }
 0x1f1   :  { %1186 = vst [vmem:[#allocation2 + $0xa0] sm:$0xff] %v1635_v61  ;;  %v953_v20 = vmax.f32 %v858_v16, 0.0  ;;  %v862_v22 = vadd.f32 %v861_v17, %v2256_v51 }
 0x1f2   :  { %v863_v24 = vpop.f32.mrf.mxu1 }
 0x1f3   :  { %v1636_v27 = vpack.c.bf16 %v953_v20, %v952_v18  ;;  %v864_v28 = vadd.f32 %v863_v24, %v2260_v45  ;;  %1406 = vmatprep.mubr.f32.mxu0 %v953_v20  ;;  %v954_v25 = vmax.f32 %v862_v22, 0.0 }
 0x1f4   :  { %v865_v29 = vpop.f32.mrf.mxu1  ;;  %1407 = vmatmul.mubr.f32.gmra.mxu0 %v952_v18 }
 0x1f5   :  { %1187 = vst [vmem:[#allocation2 + $0xa8] sm:$0xff] %v1636_v27  ;;  %v955_v26 = vmax.f32 %v864_v28, 0.0  ;;  %v866_v53 = vadd.f32 %v865_v29, %v2256_v51 }
 0x1f6   :  { %v867_v31 = vpop.f32.mrf.mxu1 }
 0x1f7   :  { %v1637_v36 = vpack.c.bf16 %v955_v26, %v954_v25  ;;  %v868_v62 = vadd.f32 %v867_v31, %v2260_v45  ;;  %1411 = vmatprep.mubr.f32.mxu0 %v955_v26  ;;  %v956_v7 = vmax.f32 %v866_v53, 0.0  ;;  %v2329_v31 = vld [vmem:[%s2467_s5] ss:$0 sm:$0xff] }
 0x1f8   :  { %v871_v32 = vpop.f32.mrf.mxu1  ;;  %1412 = vmatmul.mubr.f32.gmra.mxu0 %v954_v25 }
 0x1f9   :  { %1188 = vst [vmem:[#allocation2 + $0xb0] sm:$0xff] %v1637_v36  ;;  %v957_v34 = vmax.f32 %v868_v62, 0.0  ;;  %v872_v37 = vadd.f32 %v871_v32, %v2256_v51 }
 0x1fa   :  { %v873_v38 = vpop.f32.mrf.mxu1 }
 0x1fb   :  { %v1638_v57 = vpack.c.bf16 %v957_v34, %v956_v7  ;;  %v874_v40 = vadd.f32 %v873_v38, %v2260_v45  ;;  %1416 = vmatprep.mubr.f32.mxu0 %v957_v34  ;;  %v958_v23 = vmax.f32 %v872_v37, 0.0 }
 0x1fc   :  { %v875_v21 = vpop.f32.mrf.mxu1  ;;  %1417 = vmatmul.mubr.f32.gmra.mxu0 %v956_v7 }
 0x1fd   :  { %1189 = vst [vmem:[#allocation2 + $0xb8] sm:$0xff] %v1638_v57  ;;  %v959_v35 = vmax.f32 %v874_v40, 0.0  ;;  %v876_v41 = vadd.f32 %v875_v21, %v2256_v51 }
 0x1fe   :  { %v877_v19 = vpop.f32.mrf.mxu1 }
 0x1ff   :  { %v1639_v30 = vpack.c.bf16 %v959_v35, %v958_v23  ;;  %v878_v42 = vadd.f32 %v877_v19, %v2260_v45  ;;  %1421 = vmatprep.mubr.f32.mxu0 %v959_v35  ;;  %v960_v46 = vmax.f32 %v876_v41, 0.0 }
 0x200   :  { %v881_v43 = vpop.f32.mrf.mxu1  ;;  %1422 = vmatmul.mubr.f32.gmra.mxu0 %v958_v23 }
 0x201   :  { %1190 = vst [vmem:[#allocation2 + $0xc0] sm:$0xff] %v1639_v30  ;;  %v961_v47 = vmax.f32 %v878_v42, 0.0  ;;  %v882_v59 = vadd.f32 %v881_v43, %v2256_v51 }
 0x202   :  { %v883_v48 = vpop.f32.mrf.mxu1 }
 0x203   :  { %v1640_v49 = vpack.c.bf16 %v961_v47, %v960_v46  ;;  %v884_v50 = vadd.f32 %v883_v48, %v2260_v45  ;;  %1426 = vmatprep.mubr.f32.mxu0 %v961_v47  ;;  %v962_v60 = vmax.f32 %v882_v59, 0.0 }
 0x204   :  { %v885_v12 = vpop.f32.mrf.mxu1  ;;  %1427 = vmatmul.mubr.f32.gmra.mxu0 %v960_v46 }
 0x205   :  { %1191 = vst [vmem:[#allocation2 + $0xc8] sm:$0xff] %v1640_v49  ;;  %v963_v52 = vmax.f32 %v884_v50, 0.0  ;;  %v886_v58 = vadd.f32 %v885_v12, %v2256_v51 }
 0x206   :  { %v887_v63 = vpop.f32.mrf.mxu1 }
 0x207   :  { %v1641_v2 = vpack.c.bf16 %v963_v52, %v962_v60  ;;  %v888_v44 = vadd.f32 %v887_v63, %v2260_v45  ;;  %1431 = vmatprep.mubr.f32.mxu0 %v963_v52  ;;  %v964_v14 = vmax.f32 %v886_v58, 0.0 }
 0x208   :  { %v891_v9 = vpop.f32.mrf.mxu1  ;;  %1432 = vmatmul.mubr.f32.gmra.mxu0 %v962_v60 }
 0x209   :  { %1192 = vst [vmem:[#allocation2 + $0xd0] sm:$0xff] %v1641_v2  ;;  %v965_v8 = vmax.f32 %v888_v44, 0.0  ;;  %v892_v56 = vadd.f32 %v891_v9, %v2256_v51 }
 0x20a   :  { %v893_v0 = vpop.f32.mrf.mxu1 }
 0x20b   :  { %v1642_v54 = vpack.c.bf16 %v965_v8, %v964_v14  ;;  %v894_v55 = vadd.f32 %v893_v0, %v2260_v45  ;;  %1436 = vmatprep.mubr.f32.mxu0 %v965_v8  ;;  %v966_v3 = vmax.f32 %v892_v56, 0.0 }
 0x20c   :  { %v895_v1 = vpop.f32.mrf.mxu1  ;;  %1437 = vmatmul.mubr.f32.gmra.mxu0 %v964_v14 }
 0x20d   :  { %1193 = vst [vmem:[#allocation2 + $0xd8] sm:$0xff] %v1642_v54  ;;  %v967_v4 = vmax.f32 %v894_v55, 0.0  ;;  %v896_v6 = vadd.f32 %v895_v1, %v2256_v51 }
 0x20e   :  { %v897_v10 = vpop.f32.mrf.mxu1 }
 0x20f   :  { %v1643_v11 = vpack.c.bf16 %v967_v4, %v966_v3  ;;  %v898_v13 = vadd.f32 %v897_v10, %v2260_v45  ;;  %1441 = vmatprep.mubr.f32.mxu0 %v967_v4  ;;  %v968_v5 = vmax.f32 %v896_v6, 0.0 }
 0x210   :  { %v901_v39 = vpop.f32.mrf.mxu1  ;;  %1442 = vmatmul.mubr.f32.gmra.mxu0 %v966_v3 }
 0x211   :  { %1194 = vst [vmem:[#allocation2 + $0xe0] sm:$0xff] %v1643_v11  ;;  %v969_v15 = vmax.f32 %v898_v13, 0.0  ;;  %v902_v33 = vadd.f32 %v901_v39, %v2256_v51 }
 0x212   :  { %v903_v61 = vpop.f32.mrf.mxu1 }
 0x213   :  { %v1644_v16 = vpack.c.bf16 %v969_v15, %v968_v5  ;;  %v904_v17 = vadd.f32 %v903_v61, %v2260_v45  ;;  %1446 = vmatprep.mubr.f32.mxu0 %v969_v15  ;;  %v970_v20 = vmax.f32 %v902_v33, 0.0 }
 0x214   :  { %v905_v18 = vpop.f32.mrf.mxu1  ;;  %1447 = vmatmul.mubr.f32.gmra.mxu0 %v968_v5 }
 0x215   :  { %1195 = vst [vmem:[#allocation2 + $0xe8] sm:$0xff] %v1644_v16  ;;  %v971_v22 = vmax.f32 %v904_v17, 0.0  ;;  %v906_v24 = vadd.f32 %v905_v18, %v2256_v51 }
 0x216   :  { %v907_v27 = vpop.f32.mrf.mxu1 }
 0x217   :  { %v1645_v28 = vpack.c.bf16 %v971_v22, %v970_v20  ;;  %v908_v29 = vadd.f32 %v907_v27, %v2260_v45  ;;  %1451 = vmatprep.mubr.f32.mxu0 %v971_v22  ;;  %v972_v25 = vmax.f32 %v906_v24, 0.0 }
 0x218   :  { %1452 = vmatmul.mubr.f32.gmra.mxu0 %v970_v20 }
 0x219   :  { %1196 = vst [vmem:[#allocation2 + $0xf0] sm:$0xff] %v1645_v28  ;;  %v973_v26 = vmax.f32 %v908_v29, 0.0 }
 0x21b   :  { %v1646_v53 = vpack.c.bf16 %v973_v26, %v972_v25  ;;  %1456 = vmatprep.mubr.f32.mxu0 %v973_v26 }
 0x21c   :  { %1457 = vmatmul.mubr.f32.gmra.mxu0 %v972_v25 }
 0x21d   :  { %1197 = vst [vmem:[#allocation2 + $0xf8] sm:$0xff] %v1646_v53 }
 0x260   :  { %v1303_v51 = vpop.f32.mrf.mxu0 }
 0x261   :  { %1737 = shalt.err (!%p1734_p4)
}
 0x262   :  { %s1751_s24 = smov 128   ;;  %s1752_s25 = smov 8   ;;  %v1304_v45 = vadd.f32 %v2329_v31, %v1303_v51  ;;  %v1305_v36 = vpop.f32.mrf.mxu0 }
 0x263   :  { %1505 = dma.vmem_to_hbm [thread:$0]  %s1500_s21, 4096, %s2468_s6, [#allocation3], %s1751_s24, %s1751_s24, %s1752_s25  }
 0x264   :  { %1462 = vst [vmem:[%s2469_s7] sm:$0xff] %v1304_v45  ;;  %v1308_v62 = vpop.f32.mrf.mxu0 }
 0x265   :  { %v1309_v32 = vadd.f32 %v2329_v31, %v1308_v62 }
 0x266   :  { %v1310_v7 = vpop.f32.mrf.mxu0 }
 0x267   :  { %1463 = vst [vmem:[%s2469_s7 + $0x8] sm:$0xff] %v1309_v32 }
 0x268   :  { %v1313_v34 = vpop.f32.mrf.mxu0 }
 0x269   :  { %v1314_v37 = vadd.f32 %v2329_v31, %v1313_v34 }
 0x26a   :  { %v1315_v38 = vpop.f32.mrf.mxu0 }
 0x26b   :  { %1464 = vst [vmem:[%s2469_s7 + $0x10] sm:$0xff] %v1314_v37 }
 0x26c   :  { %v1318_v57 = vpop.f32.mrf.mxu0 }
 0x26d   :  { %v1319_v40 = vadd.f32 %v2329_v31, %v1318_v57 }
 0x26e   :  { %v1320_v21 = vpop.f32.mrf.mxu0 }
 0x26f   :  { %1465 = vst [vmem:[%s2469_s7 + $0x18] sm:$0xff] %v1319_v40 }
 0x270   :  { %v1323_v23 = vpop.f32.mrf.mxu0 }
 0x271   :  { %v1324_v35 = vadd.f32 %v2329_v31, %v1323_v23 }
 0x272   :  { %v1325_v41 = vpop.f32.mrf.mxu0 }
 0x273   :  { %1466 = vst [vmem:[%s2469_s7 + $0x20] sm:$0xff] %v1324_v35 }
 0x274   :  { %v1328_v19 = vpop.f32.mrf.mxu0 }
 0x275   :  { %v1329_v30 = vadd.f32 %v2329_v31, %v1328_v19 }
 0x276   :  { %v1330_v42 = vpop.f32.mrf.mxu0 }
 0x277   :  { %1467 = vst [vmem:[%s2469_s7 + $0x28] sm:$0xff] %v1329_v30 }
 0x278   :  { %v1333_v43 = vpop.f32.mrf.mxu0 }
 0x279   :  { %v1334_v46 = vadd.f32 %v2329_v31, %v1333_v43 }
 0x27a   :  { %v1335_v47 = vpop.f32.mrf.mxu0 }
 0x27b   :  { %1468 = vst [vmem:[%s2469_s7 + $0x30] sm:$0xff] %v1334_v46 }
 0x27c   :  { %v1338_v59 = vpop.f32.mrf.mxu0 }
 0x27d   :  { %v1339_v48 = vadd.f32 %v2329_v31, %v1338_v59 }
 0x27e   :  { %v1340_v49 = vpop.f32.mrf.mxu0 }
 0x27f   :  { %1469 = vst [vmem:[%s2469_s7 + $0x38] sm:$0xff] %v1339_v48 }
 0x280   :  { %v1343_v50 = vpop.f32.mrf.mxu0 }
 0x281   :  { %v1344_v12 = vadd.f32 %v2329_v31, %v1343_v50 }
 0x282   :  { %v1345_v60 = vpop.f32.mrf.mxu0 }
 0x283   :  { %1470 = vst [vmem:[%s2469_s7 + $0x40] sm:$0xff] %v1344_v12 }
 0x284   :  { %v1348_v52 = vpop.f32.mrf.mxu0 }
 0x285   :  { %v1349_v58 = vadd.f32 %v2329_v31, %v1348_v52 }
 0x286   :  { %v1350_v63 = vpop.f32.mrf.mxu0 }
 0x287   :  { %1471 = vst [vmem:[%s2469_s7 + $0x48] sm:$0xff] %v1349_v58 }
 0x288   :  { %v1353_v2 = vpop.f32.mrf.mxu0 }
 0x289   :  { %v1354_v44 = vadd.f32 %v2329_v31, %v1353_v2 }
 0x28a   :  { %v1355_v9 = vpop.f32.mrf.mxu0 }
 0x28b   :  { %1472 = vst [vmem:[%s2469_s7 + $0x50] sm:$0xff] %v1354_v44 }
 0x28c   :  { %v1358_v14 = vpop.f32.mrf.mxu0 }
 0x28d   :  { %v1359_v8 = vadd.f32 %v2329_v31, %v1358_v14 }
 0x28e   :  { %v1360_v56 = vpop.f32.mrf.mxu0 }
 0x28f   :  { %1473 = vst [vmem:[%s2469_s7 + $0x58] sm:$0xff] %v1359_v8 }
 0x290   :  { %v1363_v0 = vpop.f32.mrf.mxu0 }
 0x291   :  { %v1364_v54 = vadd.f32 %v2329_v31, %v1363_v0 }
 0x292   :  { %v1365_v55 = vpop.f32.mrf.mxu0 }
 0x293   :  { %1474 = vst [vmem:[%s2469_s7 + $0x60] sm:$0xff] %v1364_v54 }
 0x294   :  { %v1368_v1 = vpop.f32.mrf.mxu0 }
 0x295   :  { %v1369_v3 = vadd.f32 %v2329_v31, %v1368_v1 }
 0x296   :  { %v1370_v4 = vpop.f32.mrf.mxu0 }
 0x297   :  { %1475 = vst [vmem:[%s2469_s7 + $0x68] sm:$0xff] %v1369_v3 }
 0x298   :  { %v1373_v6 = vpop.f32.mrf.mxu0 }
 0x299   :  { %v1374_v10 = vadd.f32 %v2329_v31, %v1373_v6 }
 0x29a   :  { %v1375_v11 = vpop.f32.mrf.mxu0 }
 0x29b   :  { %1476 = vst [vmem:[%s2469_s7 + $0x70] sm:$0xff] %v1374_v10 }
 0x29c   :  { %v1378_v13 = vpop.f32.mrf.mxu0 }
 0x29d   :  { %v1379_v39 = vadd.f32 %v2329_v31, %v1378_v13 }
 0x29e   :  { %v1380_v5 = vpop.f32.mrf.mxu0 }
 0x29f   :  { %1477 = vst [vmem:[%s2469_s7 + $0x78] sm:$0xff] %v1379_v39 }
 0x2a0   :  { %v1383_v15 = vpop.f32.mrf.mxu0 }
 0x2a1   :  { %v1384_v33 = vadd.f32 %v2329_v31, %v1383_v15 }
 0x2a2   :  { %v1385_v61 = vpop.f32.mrf.mxu0 }
 0x2a3   :  { %1478 = vst [vmem:[%s2469_s7 + $0x80] sm:$0xff] %v1384_v33 }
 0x2a4   :  { %v1388_v16 = vpop.f32.mrf.mxu0 }
 0x2a5   :  { %v1389_v17 = vadd.f32 %v2329_v31, %v1388_v16 }
 0x2a6   :  { %v1390_v18 = vpop.f32.mrf.mxu0 }
 0x2a7   :  { %1479 = vst [vmem:[%s2469_s7 + $0x88] sm:$0xff] %v1389_v17 }
 0x2a8   :  { %v1393_v20 = vpop.f32.mrf.mxu0 }
 0x2a9   :  { %v1394_v22 = vadd.f32 %v2329_v31, %v1393_v20 }
 0x2aa   :  { %v1395_v24 = vpop.f32.mrf.mxu0 }
 0x2ab   :  { %1480 = vst [vmem:[%s2469_s7 + $0x90] sm:$0xff] %v1394_v22 }
 0x2ac   :  { %v1398_v27 = vpop.f32.mrf.mxu0 }
 0x2ad   :  { %v1399_v28 = vadd.f32 %v2329_v31, %v1398_v27 }
 0x2ae   :  { %v1400_v29 = vpop.f32.mrf.mxu0 }
 0x2af   :  { %1481 = vst [vmem:[%s2469_s7 + $0x98] sm:$0xff] %v1399_v28 }
 0x2b0   :  { %v1403_v25 = vpop.f32.mrf.mxu0 }
 0x2b1   :  { %v1404_v26 = vadd.f32 %v2329_v31, %v1403_v25 }
 0x2b2   :  { %v1405_v53 = vpop.f32.mrf.mxu0 }
 0x2b3   :  { %1482 = vst [vmem:[%s2469_s7 + $0xa0] sm:$0xff] %v1404_v26 }
 0x2b4   :  { %v1408_v51 = vpop.f32.mrf.mxu0 }
 0x2b5   :  { %v1409_v45 = vadd.f32 %v2329_v31, %v1408_v51 }
 0x2b6   :  { %v1410_v36 = vpop.f32.mrf.mxu0 }
 0x2b7   :  { %1483 = vst [vmem:[%s2469_s7 + $0xa8] sm:$0xff] %v1409_v45 }
 0x2b8   :  { %v1413_v62 = vpop.f32.mrf.mxu0 }
 0x2b9   :  { %v1414_v32 = vadd.f32 %v2329_v31, %v1413_v62 }
 0x2ba   :  { %v1415_v7 = vpop.f32.mrf.mxu0 }
 0x2bb   :  { %1484 = vst [vmem:[%s2469_s7 + $0xb0] sm:$0xff] %v1414_v32 }
 0x2bc   :  { %v1418_v34 = vpop.f32.mrf.mxu0 }
 0x2bd   :  { %v1419_v37 = vadd.f32 %v2329_v31, %v1418_v34 }
 0x2be   :  { %v1420_v38 = vpop.f32.mrf.mxu0 }
 0x2bf   :  { %1485 = vst [vmem:[%s2469_s7 + $0xb8] sm:$0xff] %v1419_v37 }
 0x2c0   :  { %v1423_v57 = vpop.f32.mrf.mxu0 }
 0x2c1   :  { %v1424_v40 = vadd.f32 %v2329_v31, %v1423_v57 }
 0x2c2   :  { %v1425_v21 = vpop.f32.mrf.mxu0 }
 0x2c3   :  { %1486 = vst [vmem:[%s2469_s7 + $0xc0] sm:$0xff] %v1424_v40 }
 0x2c4   :  { %v1428_v23 = vpop.f32.mrf.mxu0 }
 0x2c5   :  { %v1429_v35 = vadd.f32 %v2329_v31, %v1428_v23 }
 0x2c6   :  { %v1430_v41 = vpop.f32.mrf.mxu0 }
 0x2c7   :  { %1487 = vst [vmem:[%s2469_s7 + $0xc8] sm:$0xff] %v1429_v35 }
 0x2c8   :  { %v1433_v19 = vpop.f32.mrf.mxu0 }
 0x2c9   :  { %v1434_v30 = vadd.f32 %v2329_v31, %v1433_v19 }
 0x2ca   :  { %v1435_v42 = vpop.f32.mrf.mxu0 }
 0x2cb   :  { %1488 = vst [vmem:[%s2469_s7 + $0xd0] sm:$0xff] %v1434_v30 }
 0x2cc   :  { %v1438_v43 = vpop.f32.mrf.mxu0 }
 0x2cd   :  { %v1439_v46 = vadd.f32 %v2329_v31, %v1438_v43 }
 0x2ce   :  { %v1440_v47 = vpop.f32.mrf.mxu0 }
 0x2cf   :  { %1489 = vst [vmem:[%s2469_s7 + $0xd8] sm:$0xff] %v1439_v46 }
 0x2d0   :  { %v1443_v59 = vpop.f32.mrf.mxu0 }
 0x2d1   :  { %v1444_v48 = vadd.f32 %v2329_v31, %v1443_v59 }
 0x2d2   :  { %v1445_v49 = vpop.f32.mrf.mxu0 }
 0x2d3   :  { %1490 = vst [vmem:[%s2469_s7 + $0xe0] sm:$0xff] %v1444_v48 }
 0x2d4   :  { %v1448_v50 = vpop.f32.mrf.mxu0 }
 0x2d5   :  { %v1449_v12 = vadd.f32 %v2329_v31, %v1448_v50 }
 0x2d6   :  { %v1450_v60 = vpop.f32.mrf.mxu0 }
 0x2d7   :  { %1491 = vst [vmem:[%s2469_s7 + $0xe8] sm:$0xff] %v1449_v12 }
 0x2d8   :  { %v1453_v52 = vpop.f32.mrf.mxu0 }
 0x2d9   :  { %v1454_v58 = vadd.f32 %v2329_v31, %v1453_v52 }
 0x2da   :  { %v1455_v63 = vpop.f32.mrf.mxu0 }
 0x2db   :  { %1492 = vst [vmem:[%s2469_s7 + $0xf0] sm:$0xff] %v1454_v58 }
 0x2dc   :  { %v1458_v2 = vpop.f32.mrf.mxu0 }
 0x2dd   :  { %v1459_v44 = vadd.f32 %v2329_v31, %v1458_v2 }
 0x2de   :  { %v1460_v9 = vpop.f32.mrf.mxu0 }
 0x2df   :  { %1493 = vst [vmem:[%s2469_s7 + $0xf8] sm:$0xff] %v1459_v44 }
 0x2e0   :  { %1746 = dma.done.wait [#allocation3], 4096  }
 0x2e1   :  { %1747 = vsyncadd [#allocation3], 4294963200 }
 0x2e2   :  { %1513 = vsyncpa [#allocation3], 1 }

</bundles_post_ra>
